<compile_context>
chip_gen: v7x
topology: tpu7x:2x2x1
jax: 0.10.0
libtpu: 0.0.40
codegen_flags: <defaults>
</compile_context>

<pallas_src>
import jax
import jax.numpy as jnp
from jax.experimental import pallas as pl
from jax.experimental.pallas import tpu as pltpu

# ---- hyperparameters (match CRNN.__init__; conv_channels shrunk for a small
#      test but kept lane-aligned at 128, which the constructor allows) ------
NUM_CLASSES = 11
NUM_CONV_LAYERS = 3
CONV_CHANNELS = 128          # module default is 256; 128 keeps the test small
BACKBONE_CHANNELS = 2048     # resnet50 layer4 output channels (fixed in module)
POOL_H = 7                   # AvgPool2d(kernel_size=(7, 1)) => backbone H == 7
BN_EPS = 1e-5


def _crnn_kernel(feat_ref, wr_ref, br_ref, wcs_ref, bc_ref,
                 bn_scale_ref, bn_shift_ref, wf_ref, bf_ref, out_ref):
    """One block of batch elements per grid step.

    feat_ref : (B, W, Cin)   H-pooled backbone features, bf16 (channels last)
    wr_ref   : (Cin, C)      conv_reduce 1x1 weight (transposed), bf16
    br_ref   : (1, C)        conv_reduce bias, f32
    wcs_ref  : (L, 3*C, C)   (1,3) conv taps stacked [w-1; w; w+1] per layer
    bc_ref   : (L, 1, C)     (1,3) conv biases
    bn_*     : (L, 1, C)     folded BatchNorm (eval mode: running stats)
    wf_ref   : (C, Kp)       final 1x1 conv weight, lane-padded to Kp=128
    bf_ref   : (1, Kp)       final 1x1 conv bias, lane-padded
    out_ref  : (B, W, Kp)
    """
    B, W, Cin = feat_ref.shape
    C = br_ref.shape[-1]
    L = wcs_ref.shape[0]
    BW = B * W

    # conv_reduce: 1x1 conv == per-pixel channel matmul (bf16 MXU, f32 acc).
    feat = feat_ref[...].reshape(BW, Cin)                            # bf16
    x = jnp.dot(feat, wr_ref[...],
                preferred_element_type=jnp.float32) + br_ref[...]    # (BW, C) f32

    # Boundary masks along W, hoisted out of the layer loop.  Rolling the
    # flattened (BW, C) block mixes rows across batch elements / ends; those
    # rows are exactly w==0 (needs zero "previous") and w==W-1 (zero "next").
    w_idx = jax.lax.broadcasted_iota(jnp.int32, (BW, 1), 0) % W
    is_first = w_idx == 0
    is_last = w_idx == (W - 1)

    for l in range(L):                                               # static unroll
        x_prev = jnp.where(is_first, 0.0, pltpu.roll(x, 1, 0))       # x[w-1]
        x_next = jnp.where(is_last, 0.0, pltpu.roll(x, BW - 1, 0))   # x[w+1]
        win = jnp.concatenate([x_prev, x, x_next], axis=-1)          # (BW, 3C)
        y = jnp.dot(win, wcs_ref[l],
                    preferred_element_type=jnp.float32) + bc_ref[l]  # Conv2d (1,3)
        y = y * bn_scale_ref[l] + bn_shift_ref[l]                    # BatchNorm2d (eval)
        x = jnp.maximum(y, 0.0)                                      # ReLU

    out = jnp.dot(x, wf_ref[...],
                  preferred_element_type=jnp.float32) + bf_ref[...]  # (BW, Kp)
    out_ref[...] = out.reshape(B, W, -1)


def crnn_forward(feats_nchw, params, b_blk=None):
    """feats_nchw: backbone output, PyTorch layout (N, 2048, 7, W).
    Returns (W, N, num_classes), matching output.squeeze(2).permute(2, 0, 1)."""
    wr, br, wc, bc, bn_scale, bn_shift, wf, bf = params
    N, Cin, H, W = feats_nchw.shape
    L, _, C, _ = wc.shape
    K = wf.shape[-1]
    KPAD = ((K + 127) // 128) * 128          # lane-dense output stores

    # AvgPool2d((7,1)) commutes with the linear 1x1 conv_reduce: pool over H
    # here so the kernel only reads a 7x smaller, bf16 feature tensor.  XLA
    # fuses mean + transpose + cast into one pass over the backbone output.
    pooled = jnp.mean(feats_nchw.astype(jnp.float32), axis=2)        # (N, Cin, W)
    pooled = jnp.transpose(pooled, (0, 2, 1)).astype(jnp.bfloat16)   # (N, W, Cin)

    if b_blk is None:
        # Enough rows to fill the MXU (target >=128 rows in the reduce matmul)
        # while keeping >=2 grid steps so both v7x TensorCores get work.
        b_blk = max(1, min(-(-128 // W), max(1, N // 2)))
    n_pad = (-N) % b_blk
    if n_pad:
        pooled = jnp.pad(pooled, ((0, n_pad), (0, 0), (0, 0)))
    n_total = N + n_pad

    wr_b = wr.astype(jnp.bfloat16)                   # bf16 weights for the MXU
    wcs = wc.reshape(L, 3 * C, C)                    # contiguous (3C, C) slab per layer
    wf_p = jnp.pad(wf, ((0, 0), (0, KPAD - K)))
    bf_p = jnp.pad(bf, ((0, 0), (0, KPAD - K)))

    out_pad = pl.pallas_call(
        _crnn_kernel,
        out_shape=jax.ShapeDtypeStruct((n_total, W, KPAD), jnp.float32),
        grid=(n_total // b_blk,),
        in_specs=[
            pl.BlockSpec((b_blk, W, Cin), lambda n: (n, 0, 0)),
            pl.BlockSpec((Cin, C), lambda n: (0, 0)),
            pl.BlockSpec((1, C), lambda n: (0, 0)),
            pl.BlockSpec((L, 3 * C, C), lambda n: (0, 0, 0)),
            pl.BlockSpec((L, 1, C), lambda n: (0, 0, 0)),
            pl.BlockSpec((L, 1, C), lambda n: (0, 0, 0)),
            pl.BlockSpec((L, 1, C), lambda n: (0, 0, 0)),
            pl.BlockSpec((C, KPAD), lambda n: (0, 0)),
            pl.BlockSpec((1, KPAD), lambda n: (0, 0)),
        ],
        out_specs=pl.BlockSpec((b_blk, W, KPAD), lambda n: (n, 0, 0)),
        compiler_params=pltpu.CompilerParams(
            dimension_semantics=("parallel",)),
    )(pooled, wr_b, br, wcs, bc, bn_scale, bn_shift, wf_p, bf_p)

    out = out_pad[:N, :, :K]                 # drop batch padding & lane padding
    # output.squeeze(2).permute(2, 0, 1): (N, K, W) -> (W, N, K)
    return jnp.transpose(out, (1, 0, 2))


def ref_forward(feats_nchw, params):
    """Pure-JAX f32 reference mirroring the PyTorch op order exactly."""
    wr, br, wc, bc, bn_scale, bn_shift, wf, bf = params
    hp = jax.lax.Precision.HIGHEST
    x = jnp.transpose(feats_nchw, (0, 2, 3, 1)).astype(jnp.float32)   # (N,H,W,Cin)
    x = jnp.einsum('nhwc,cd->nhwd', x, wr, precision=hp) + br         # conv_reduce
    x = jnp.mean(x, axis=1)                                           # AvgPool2d((7,1))
    N, W, C = x.shape
    L = wc.shape[0]
    for l in range(L):
        xp = jnp.pad(x, ((0, 0), (1, 1), (0, 0)))
        y = (jnp.einsum('nwc,cd->nwd', xp[:, 0:W], wc[l, 0], precision=hp)
             + jnp.einsum('nwc,cd->nwd', xp[:, 1:W + 1], wc[l, 1], precision=hp)
             + jnp.einsum('nwc,cd->nwd', xp[:, 2:W + 2], wc[l, 2], precision=hp)
             + bc[l])
        y = y * bn_scale[l] + bn_shift[l]
        x = jnp.maximum(y, 0.0)
    out = jnp.einsum('nwc,ck->nwk', x, wf, precision=hp) + bf
    return jnp.transpose(out, (1, 0, 2))


def init_params(key):
    ks = jax.random.split(key, 10)
    C = CONV_CHANNELS
    L = NUM_CONV_LAYERS
    wr = 0.02 * jax.random.normal(ks[0], (BACKBONE_CHANNELS, C), jnp.float32)
    br = 0.01 * jax.random.normal(ks[1], (1, C), jnp.float32)
    wc = 0.10 * jax.random.normal(ks[2], (L, 3, C, C), jnp.float32)
    bc = 0.01 * jax.random.normal(ks[3], (L, 1, C), jnp.float32)
    gamma = 1.0 + 0.1 * jax.random.normal(ks[4], (L, 1, C), jnp.float32)
    beta = 0.1 * jax.random.normal(ks[5], (L, 1, C), jnp.float32)
    run_mean = 0.1 * jax.random.normal(ks[6], (L, 1, C), jnp.float32)
    run_var = 1.0 + 0.1 * jnp.abs(jax.random.normal(ks[7], (L, 1, C), jnp.float32))
    # Fold eval-mode BatchNorm into a per-channel affine.
    bn_scale = gamma / jnp.sqrt(run_var + BN_EPS)
    bn_shift = beta - run_mean * bn_scale
    wf = 0.10 * jax.random.normal(ks[8], (C, NUM_CLASSES), jnp.float32)
    bf = 0.01 * jax.random.normal(ks[9], (1, NUM_CLASSES), jnp.float32)
    return (wr, br, wc, bc, bn_scale, bn_shift, wf, bf)


if __name__ == "__main__":
    key = jax.random.PRNGKey(0)
    k_feat, k_params = jax.random.split(key)

    # Small shapes: batch=2, backbone feature map (2048, 7, 8)
    N, W = 2, 8
    feats = jax.random.normal(
        k_feat, (N, BACKBONE_CHANNELS, POOL_H, W), jnp.float32)
    params = init_params(k_params)

    fwd = jax.jit(crnn_forward)
    out = jax.block_until_ready(fwd(feats, params))
    assert out.shape == (W, N, NUM_CLASSES), out.shape

    ref = jax.block_until_ready(ref_forward(feats, params))
    # bf16 MXU inputs on the 2048-wide contraction => loosen vs. f32 reference.
    max_err = float(jnp.max(jnp.abs(out - ref)))
    assert jnp.allclose(out, ref, rtol=5e-2, atol=5e-2), max_err

    print("KERNEL_OK")
</pallas_src>

<mosaic_0001>
module attributes {stable_mosaic.version = 11 : i64} {
  func.func @_crnn_kernel(%arg0: i32, %arg1: memref<1x8x2048xbf16, #tpu.memory_space<vmem>>, %arg2: memref<2048x128xbf16, #tpu.memory_space<vmem>>, %arg3: memref<1x128xf32, #tpu.memory_space<vmem>>, %arg4: memref<3x384x128xf32, #tpu.memory_space<vmem>>, %arg5: memref<3x1x128xf32, #tpu.memory_space<vmem>>, %arg6: memref<3x1x128xf32, #tpu.memory_space<vmem>>, %arg7: memref<3x1x128xf32, #tpu.memory_space<vmem>>, %arg8: memref<128x128xf32, #tpu.memory_space<vmem>>, %arg9: memref<1x128xf32, #tpu.memory_space<vmem>>, %arg10: memref<1x8x128xf32, #tpu.memory_space<vmem>>) attributes {dimension_semantics = [#tpu.dimension_semantics<parallel>], iteration_bounds = array<i64: 2>, scalar_prefetch = 0 : i64, scratch_operands = 0 : i64, tpu.core_type = #tpu.core_type<tc>, window_params = [{transform_indices = @transform_0, window_bounds = array<i64: 1, 8, 2048>}, {pipeline_mode = #tpu.pipeline_mode<synchronous>, transform_indices = @transform_1, window_bounds = array<i64: 2048, 128>}, {pipeline_mode = #tpu.pipeline_mode<synchronous>, transform_indices = @transform_2, window_bounds = array<i64: 1, 128>}, {pipeline_mode = #tpu.pipeline_mode<synchronous>, transform_indices = @transform_3, window_bounds = array<i64: 3, 384, 128>}, {pipeline_mode = #tpu.pipeline_mode<synchronous>, transform_indices = @transform_4, window_bounds = array<i64: 3, 1, 128>}, {pipeline_mode = #tpu.pipeline_mode<synchronous>, transform_indices = @transform_5, window_bounds = array<i64: 3, 1, 128>}, {pipeline_mode = #tpu.pipeline_mode<synchronous>, transform_indices = @transform_6, window_bounds = array<i64: 3, 1, 128>}, {pipeline_mode = #tpu.pipeline_mode<synchronous>, transform_indices = @transform_7, window_bounds = array<i64: 128, 128>}, {pipeline_mode = #tpu.pipeline_mode<synchronous>, transform_indices = @transform_8, window_bounds = array<i64: 1, 128>}, {transform_indices = @transform_9, window_bounds = array<i64: 1, 8, 128>}]} {
    %c0 = arith.constant 0 : index
    %c0_0 = arith.constant 0 : index
    %c0_1 = arith.constant 0 : index
    %0 = vector.load %arg1[%c0, %c0_0, %c0_1] : memref<1x8x2048xbf16, #tpu.memory_space<vmem>>, vector<1x8x2048xbf16>
    %1 = vector.shape_cast %0 : vector<1x8x2048xbf16> to vector<8x2048xbf16>
    %c0_2 = arith.constant 0 : index
    %c0_3 = arith.constant 0 : index
    %2 = vector.load %arg2[%c0_2, %c0_3] : memref<2048x128xbf16, #tpu.memory_space<vmem>>, vector<2048x128xbf16>
    %cst = arith.constant dense<0.000000e+00> : vector<8x128xf32>
    %3 = tpu.matmul %1, %2, %cst {dimension_numbers = #tpu.dot_dimension_numbers<[1], [0], [0], [1], [0, 0, 1, 1], [], []>} : vector<8x2048xbf16>, vector<2048x128xbf16>, vector<8x128xf32> -> vector<8x128xf32>
    %c0_4 = arith.constant 0 : index
    %c0_5 = arith.constant 0 : index
    %4 = vector.load %arg3[%c0_4, %c0_5] : memref<1x128xf32, #tpu.memory_space<vmem>>, vector<1x128xf32>
    %5 = vector.broadcast %4 : vector<1x128xf32> to vector<8x128xf32>
    %6 = arith.addf %3, %5 : vector<8x128xf32>
    %7 = tpu.iota {dimensions = array<i32: 0>} : vector<8x1xi32>
    %c8_i32 = arith.constant 8 : i32
    %c0_i32 = arith.constant 0 : i32
    %8 = arith.cmpi eq, %c8_i32, %c0_i32 : i32
    %c1_i32 = arith.constant 1 : i32
    %9 = arith.select %8, %c1_i32, %c8_i32 : i32
    %10 = vector.broadcast %9 : i32 to vector<8x1xi32>
    %11 = arith.remsi %7, %10 : vector<8x1xi32>
    %c0_i32_6 = arith.constant 0 : i32
    %12 = vector.broadcast %c0_i32_6 : i32 to vector<8x1xi32>
    %13 = arith.cmpi ne, %11, %12 : vector<8x1xi32>
    %c0_i32_7 = arith.constant 0 : i32
    %14 = vector.broadcast %c0_i32_7 : i32 to vector<8x1xi32>
    %15 = arith.cmpi slt, %11, %14 : vector<8x1xi32>
    %c0_i32_8 = arith.constant 0 : i32
    %16 = arith.cmpi slt, %9, %c0_i32_8 : i32
    %17 = vector.broadcast %16 : i1 to vector<8x1xi1>
    %18 = vector.broadcast %17 : vector<8x1xi1> to vector<8x1xi1>
    %19 = arith.xori %15, %18 : vector<8x1xi1>
    %20 = arith.andi %19, %13 : vector<8x1xi1>
    %21 = vector.broadcast %9 : i32 to vector<8x1xi32>
    %22 = arith.addi %11, %21 : vector<8x1xi32>
    %23 = arith.select %20, %22, %11 : vector<8x1xi1>, vector<8x1xi32>
    %c0_i32_9 = arith.constant 0 : i32
    %24 = vector.broadcast %c0_i32_9 : i32 to vector<8x1xi32>
    %25 = arith.cmpi eq, %23, %24 : vector<8x1xi32>
    %c7_i32 = arith.constant 7 : i32
    %26 = vector.broadcast %c7_i32 : i32 to vector<8x1xi32>
    %27 = arith.cmpi eq, %23, %26 : vector<8x1xi32>
    %c1_i32_10 = arith.constant 1 : i32
    %28 = tpu.dynamic_rotate %6 by %c1_i32_10 dim 0 : vector<8x128xf32>, i32 -> vector<8x128xf32>
    %cst_11 = arith.constant 0.000000e+00 : f32
    %29 = vector.shape_cast %25 : vector<8x1xi1> to vector<8x1xi1>
    %30 = vector.broadcast %29 : vector<8x1xi1> to vector<8x128xi1>
    %31 = vector.broadcast %cst_11 : f32 to vector<8x128xf32>
    %32 = arith.select %30, %31, %28 : vector<8x128xi1>, vector<8x128xf32>
    %c7_i32_12 = arith.constant 7 : i32
    %33 = tpu.dynamic_rotate %6 by %c7_i32_12 dim 0 : vector<8x128xf32>, i32 -> vector<8x128xf32>
    %cst_13 = arith.constant 0.000000e+00 : f32
    %34 = vector.shape_cast %27 : vector<8x1xi1> to vector<8x1xi1>
    %35 = vector.broadcast %34 : vector<8x1xi1> to vector<8x128xi1>
    %36 = vector.broadcast %cst_13 : f32 to vector<8x128xf32>
    %37 = arith.select %35, %36, %33 : vector<8x128xi1>, vector<8x128xf32>
    %38 = tpu.concatenate %32, %6, %37 in 1 : vector<8x128xf32>, vector<8x128xf32>, vector<8x128xf32> -> vector<8x384xf32>
    %c0_14 = arith.constant 0 : index
    %c0_15 = arith.constant 0 : index
    %c0_16 = arith.constant 0 : index
    %39 = vector.load %arg4[%c0_14, %c0_15, %c0_16] : memref<3x384x128xf32, #tpu.memory_space<vmem>>, vector<1x384x128xf32>
    %40 = vector.shape_cast %39 : vector<1x384x128xf32> to vector<384x128xf32>
    %cst_17 = arith.constant dense<0.000000e+00> : vector<8x128xf32>
    %41 = tpu.matmul %38, %40, %cst_17 {dimension_numbers = #tpu.dot_dimension_numbers<[1], [0], [0], [1], [0, 0, 1, 1], [], []>} : vector<8x384xf32>, vector<384x128xf32>, vector<8x128xf32> -> vector<8x128xf32>
    %c0_18 = arith.constant 0 : index
    %c0_19 = arith.constant 0 : index
    %c0_20 = arith.constant 0 : index
    %42 = vector.load %arg5[%c0_18, %c0_19, %c0_20] : memref<3x1x128xf32, #tpu.memory_space<vmem>>, vector<1x1x128xf32>
    %43 = vector.shape_cast %42 : vector<1x1x128xf32> to vector<1x128xf32>
    %44 = vector.broadcast %43 : vector<1x128xf32> to vector<8x128xf32>
    %45 = arith.addf %41, %44 : vector<8x128xf32>
    %c0_21 = arith.constant 0 : index
    %c0_22 = arith.constant 0 : index
    %c0_23 = arith.constant 0 : index
    %46 = vector.load %arg6[%c0_21, %c0_22, %c0_23] : memref<3x1x128xf32, #tpu.memory_space<vmem>>, vector<1x1x128xf32>
    %47 = vector.shape_cast %46 : vector<1x1x128xf32> to vector<1x128xf32>
    %48 = vector.broadcast %47 : vector<1x128xf32> to vector<8x128xf32>
    %49 = arith.mulf %45, %48 : vector<8x128xf32>
    %c0_24 = arith.constant 0 : index
    %c0_25 = arith.constant 0 : index
    %c0_26 = arith.constant 0 : index
    %50 = vector.load %arg7[%c0_24, %c0_25, %c0_26] : memref<3x1x128xf32, #tpu.memory_space<vmem>>, vector<1x1x128xf32>
    %51 = vector.shape_cast %50 : vector<1x1x128xf32> to vector<1x128xf32>
    %52 = vector.broadcast %51 : vector<1x128xf32> to vector<8x128xf32>
    %53 = arith.addf %49, %52 : vector<8x128xf32>
    %cst_27 = arith.constant 0.000000e+00 : f32
    %54 = vector.broadcast %cst_27 : f32 to vector<8x128xf32>
    %55 = arith.maximumf %53, %54 : vector<8x128xf32>
    %c1_i32_28 = arith.constant 1 : i32
    %56 = tpu.dynamic_rotate %55 by %c1_i32_28 dim 0 : vector<8x128xf32>, i32 -> vector<8x128xf32>
    %cst_29 = arith.constant 0.000000e+00 : f32
    %57 = vector.shape_cast %25 : vector<8x1xi1> to vector<8x1xi1>
    %58 = vector.broadcast %57 : vector<8x1xi1> to vector<8x128xi1>
    %59 = vector.broadcast %cst_29 : f32 to vector<8x128xf32>
    %60 = arith.select %58, %59, %56 : vector<8x128xi1>, vector<8x128xf32>
    %c7_i32_30 = arith.constant 7 : i32
    %61 = tpu.dynamic_rotate %55 by %c7_i32_30 dim 0 : vector<8x128xf32>, i32 -> vector<8x128xf32>
    %cst_31 = arith.constant 0.000000e+00 : f32
    %62 = vector.shape_cast %27 : vector<8x1xi1> to vector<8x1xi1>
    %63 = vector.broadcast %62 : vector<8x1xi1> to vector<8x128xi1>
    %64 = vector.broadcast %cst_31 : f32 to vector<8x128xf32>
    %65 = arith.select %63, %64, %61 : vector<8x128xi1>, vector<8x128xf32>
    %66 = tpu.concatenate %60, %55, %65 in 1 : vector<8x128xf32>, vector<8x128xf32>, vector<8x128xf32> -> vector<8x384xf32>
    %c1 = arith.constant 1 : index
    %c0_32 = arith.constant 0 : index
    %c0_33 = arith.constant 0 : index
    %67 = vector.load %arg4[%c1, %c0_32, %c0_33] : memref<3x384x128xf32, #tpu.memory_space<vmem>>, vector<1x384x128xf32>
    %68 = vector.shape_cast %67 : vector<1x384x128xf32> to vector<384x128xf32>
    %cst_34 = arith.constant dense<0.000000e+00> : vector<8x128xf32>
    %69 = tpu.matmul %66, %68, %cst_34 {dimension_numbers = #tpu.dot_dimension_numbers<[1], [0], [0], [1], [0, 0, 1, 1], [], []>} : vector<8x384xf32>, vector<384x128xf32>, vector<8x128xf32> -> vector<8x128xf32>
    %c1_35 = arith.constant 1 : index
    %c0_36 = arith.constant 0 : index
    %c0_37 = arith.constant 0 : index
    %70 = vector.load %arg5[%c1_35, %c0_36, %c0_37] : memref<3x1x128xf32, #tpu.memory_space<vmem>>, vector<1x1x128xf32>
    %71 = vector.shape_cast %70 : vector<1x1x128xf32> to vector<1x128xf32>
    %72 = vector.broadcast %71 : vector<1x128xf32> to vector<8x128xf32>
    %73 = arith.addf %69, %72 : vector<8x128xf32>
    %c1_38 = arith.constant 1 : index
    %c0_39 = arith.constant 0 : index
    %c0_40 = arith.constant 0 : index
    %74 = vector.load %arg6[%c1_38, %c0_39, %c0_40] : memref<3x1x128xf32, #tpu.memory_space<vmem>>, vector<1x1x128xf32>
    %75 = vector.shape_cast %74 : vector<1x1x128xf32> to vector<1x128xf32>
    %76 = vector.broadcast %75 : vector<1x128xf32> to vector<8x128xf32>
    %77 = arith.mulf %73, %76 : vector<8x128xf32>
    %c1_41 = arith.constant 1 : index
    %c0_42 = arith.constant 0 : index
    %c0_43 = arith.constant 0 : index
    %78 = vector.load %arg7[%c1_41, %c0_42, %c0_43] : memref<3x1x128xf32, #tpu.memory_space<vmem>>, vector<1x1x128xf32>
    %79 = vector.shape_cast %78 : vector<1x1x128xf32> to vector<1x128xf32>
    %80 = vector.broadcast %79 : vector<1x128xf32> to vector<8x128xf32>
    %81 = arith.addf %77, %80 : vector<8x128xf32>
    %cst_44 = arith.constant 0.000000e+00 : f32
    %82 = vector.broadcast %cst_44 : f32 to vector<8x128xf32>
    %83 = arith.maximumf %81, %82 : vector<8x128xf32>
    %c1_i32_45 = arith.constant 1 : i32
    %84 = tpu.dynamic_rotate %83 by %c1_i32_45 dim 0 : vector<8x128xf32>, i32 -> vector<8x128xf32>
    %cst_46 = arith.constant 0.000000e+00 : f32
    %85 = vector.shape_cast %25 : vector<8x1xi1> to vector<8x1xi1>
    %86 = vector.broadcast %85 : vector<8x1xi1> to vector<8x128xi1>
    %87 = vector.broadcast %cst_46 : f32 to vector<8x128xf32>
    %88 = arith.select %86, %87, %84 : vector<8x128xi1>, vector<8x128xf32>
    %c7_i32_47 = arith.constant 7 : i32
    %89 = tpu.dynamic_rotate %83 by %c7_i32_47 dim 0 : vector<8x128xf32>, i32 -> vector<8x128xf32>
    %cst_48 = arith.constant 0.000000e+00 : f32
    %90 = vector.shape_cast %27 : vector<8x1xi1> to vector<8x1xi1>
    %91 = vector.broadcast %90 : vector<8x1xi1> to vector<8x128xi1>
    %92 = vector.broadcast %cst_48 : f32 to vector<8x128xf32>
    %93 = arith.select %91, %92, %89 : vector<8x128xi1>, vector<8x128xf32>
    %94 = tpu.concatenate %88, %83, %93 in 1 : vector<8x128xf32>, vector<8x128xf32>, vector<8x128xf32> -> vector<8x384xf32>
    %c2 = arith.constant 2 : index
    %c0_49 = arith.constant 0 : index
    %c0_50 = arith.constant 0 : index
    %95 = vector.load %arg4[%c2, %c0_49, %c0_50] : memref<3x384x128xf32, #tpu.memory_space<vmem>>, vector<1x384x128xf32>
    %96 = vector.shape_cast %95 : vector<1x384x128xf32> to vector<384x128xf32>
    %cst_51 = arith.constant dense<0.000000e+00> : vector<8x128xf32>
    %97 = tpu.matmul %94, %96, %cst_51 {dimension_numbers = #tpu.dot_dimension_numbers<[1], [0], [0], [1], [0, 0, 1, 1], [], []>} : vector<8x384xf32>, vector<384x128xf32>, vector<8x128xf32> -> vector<8x128xf32>
    %c2_52 = arith.constant 2 : index
    %c0_53 = arith.constant 0 : index
    %c0_54 = arith.constant 0 : index
    %98 = vector.load %arg5[%c2_52, %c0_53, %c0_54] : memref<3x1x128xf32, #tpu.memory_space<vmem>>, vector<1x1x128xf32>
    %99 = vector.shape_cast %98 : vector<1x1x128xf32> to vector<1x128xf32>
    %100 = vector.broadcast %99 : vector<1x128xf32> to vector<8x128xf32>
    %101 = arith.addf %97, %100 : vector<8x128xf32>
    %c2_55 = arith.constant 2 : index
    %c0_56 = arith.constant 0 : index
    %c0_57 = arith.constant 0 : index
    %102 = vector.load %arg6[%c2_55, %c0_56, %c0_57] : memref<3x1x128xf32, #tpu.memory_space<vmem>>, vector<1x1x128xf32>
    %103 = vector.shape_cast %102 : vector<1x1x128xf32> to vector<1x128xf32>
    %104 = vector.broadcast %103 : vector<1x128xf32> to vector<8x128xf32>
    %105 = arith.mulf %101, %104 : vector<8x128xf32>
    %c2_58 = arith.constant 2 : index
    %c0_59 = arith.constant 0 : index
    %c0_60 = arith.constant 0 : index
    %106 = vector.load %arg7[%c2_58, %c0_59, %c0_60] : memref<3x1x128xf32, #tpu.memory_space<vmem>>, vector<1x1x128xf32>
    %107 = vector.shape_cast %106 : vector<1x1x128xf32> to vector<1x128xf32>
    %108 = vector.broadcast %107 : vector<1x128xf32> to vector<8x128xf32>
    %109 = arith.addf %105, %108 : vector<8x128xf32>
    %cst_61 = arith.constant 0.000000e+00 : f32
    %110 = vector.broadcast %cst_61 : f32 to vector<8x128xf32>
    %111 = arith.maximumf %109, %110 : vector<8x128xf32>
    %c0_62 = arith.constant 0 : index
    %c0_63 = arith.constant 0 : index
    %112 = vector.load %arg8[%c0_62, %c0_63] : memref<128x128xf32, #tpu.memory_space<vmem>>, vector<128x128xf32>
    %cst_64 = arith.constant dense<0.000000e+00> : vector<8x128xf32>
    %113 = tpu.matmul %111, %112, %cst_64 {dimension_numbers = #tpu.dot_dimension_numbers<[1], [0], [0], [1], [0, 0, 1, 1], [], []>} : vector<8x128xf32>, vector<128x128xf32>, vector<8x128xf32> -> vector<8x128xf32>
    %c0_65 = arith.constant 0 : index
    %c0_66 = arith.constant 0 : index
    %114 = vector.load %arg9[%c0_65, %c0_66] : memref<1x128xf32, #tpu.memory_space<vmem>>, vector<1x128xf32>
    %115 = vector.broadcast %114 : vector<1x128xf32> to vector<8x128xf32>
    %116 = arith.addf %113, %115 : vector<8x128xf32>
    %117 = vector.shape_cast %116 : vector<8x128xf32> to vector<1x8x128xf32>
    %c0_67 = arith.constant 0 : index
    %c0_68 = arith.constant 0 : index
    %c0_69 = arith.constant 0 : index
    %118 = vector.load %arg10[%c0_67, %c0_68, %c0_69] : memref<1x8x128xf32, #tpu.memory_space<vmem>>, vector<1x8x128xf32>
    tpu.vector_store %arg10[%c0_67, %c0_68, %c0_69], %117 {strides = array<i32>} : memref<1x8x128xf32, #tpu.memory_space<vmem>>, vector<1x8x128xf32>,
    return
  }
  func.func @transform_0(%arg0: i32) -> (i32, i32, i32) {
    %c0_i32 = arith.constant 0 : i32
    %c0_i32_0 = arith.constant 0 : i32
    %c0_i32_1 = arith.constant 0 : i32
    return %arg0, %c0_i32, %c0_i32_0 : i32, i32, i32
  }
  func.func @transform_1(%arg0: i32) -> (i32, i32) {
    %c0_i32 = arith.constant 0 : i32
    %c0_i32_0 = arith.constant 0 : i32
    %c0_i32_1 = arith.constant 0 : i32
    return %c0_i32, %c0_i32_0 : i32, i32
  }
  func.func @transform_2(%arg0: i32) -> (i32, i32) {
    %c0_i32 = arith.constant 0 : i32
    %c0_i32_0 = arith.constant 0 : i32
    %c0_i32_1 = arith.constant 0 : i32
    return %c0_i32, %c0_i32_0 : i32, i32
  }
  func.func @transform_3(%arg0: i32) -> (i32, i32, i32) {
    %c0_i32 = arith.constant 0 : i32
    %c0_i32_0 = arith.constant 0 : i32
    %c0_i32_1 = arith.constant 0 : i32
    %c0_i32_2 = arith.constant 0 : i32
    return %c0_i32, %c0_i32_0, %c0_i32_1 : i32, i32, i32
  }
  func.func @transform_4(%arg0: i32) -> (i32, i32, i32) {
    %c0_i32 = arith.constant 0 : i32
    %c0_i32_0 = arith.constant 0 : i32
    %c0_i32_1 = arith.constant 0 : i32
    %c0_i32_2 = arith.constant 0 : i32
    return %c0_i32, %c0_i32_0, %c0_i32_1 : i32, i32, i32
  }
  func.func @transform_5(%arg0: i32) -> (i32, i32, i32) {
    %c0_i32 = arith.constant 0 : i32
    %c0_i32_0 = arith.constant 0 : i32
    %c0_i32_1 = arith.constant 0 : i32
    %c0_i32_2 = arith.constant 0 : i32
    return %c0_i32, %c0_i32_0, %c0_i32_1 : i32, i32, i32
  }
  func.func @transform_6(%arg0: i32) -> (i32, i32, i32) {
    %c0_i32 = arith.constant 0 : i32
    %c0_i32_0 = arith.constant 0 : i32
    %c0_i32_1 = arith.constant 0 : i32
    %c0_i32_2 = arith.constant 0 : i32
    return %c0_i32, %c0_i32_0, %c0_i32_1 : i32, i32, i32
  }
  func.func @transform_7(%arg0: i32) -> (i32, i32) {
    %c0_i32 = arith.constant 0 : i32
    %c0_i32_0 = arith.constant 0 : i32
    %c0_i32_1 = arith.constant 0 : i32
    return %c0_i32, %c0_i32_0 : i32, i32
  }
  func.func @transform_8(%arg0: i32) -> (i32, i32) {
    %c0_i32 = arith.constant 0 : i32
    %c0_i32_0 = arith.constant 0 : i32
    %c0_i32_1 = arith.constant 0 : i32
    return %c0_i32, %c0_i32_0 : i32, i32
  }
  func.func @transform_9(%arg0: i32) -> (i32, i32, i32) {
    %c0_i32 = arith.constant 0 : i32
    %c0_i32_0 = arith.constant 0 : i32
    %c0_i32_1 = arith.constant 0 : i32
    return %arg0, %c0_i32, %c0_i32_0 : i32, i32, i32
  }
}

</mosaic_0001>

<bundles_post_ra>
// kernel: crnn_forward.1
= control target key start
LH: loop header
LB: loop body
LE: loop exit
PB: predicated region body
PF: predicated region fallthrough
CT: control target
= control target key end

     0   :  { %s3749_s30 = smov 0   ;;  %s4741_s0 = inlined_call_operand.vmem [shape: bf16[2,8,2048], index: 0, kind: input, shape index: {}]   ;;  %s4742_s1 = inlined_call_operand.vmem [shape: bf16[2048,128], index: 1, kind: input, shape index: {}]   ;;  %s4743_s2 = inlined_call_operand.vmem [shape: f32[1,128], index: 2, kind: input, shape index: {}]   ;;  %s4744_s3 = inlined_call_operand.vmem [shape: f32[3,384,128], index: 3, kind: input, shape index: {}]   ;;  %s4745_s4 = inlined_call_operand.vmem [shape: f32[3,1,128], index: 4, kind: input, shape index: {}]   ;;  %s4746_s5 = inlined_call_operand.vmem [shape: f32[3,1,128], index: 5, kind: input, shape index: {}]   ;;  %s4747_s6 = inlined_call_operand.vmem [shape: f32[3,1,128], index: 6, kind: input, shape index: {}]   ;;  %s4748_s7 = inlined_call_operand.vmem [shape: f32[128,128], index: 7, kind: input, shape index: {}]   ;;  %s4749_s8 = inlined_call_operand.vmem [shape: f32[1,128], index: 8, kind: input, shape index: {}]   ;;  %s4750_s9 = inlined_call_operand.vmem [shape: f32[2,8,128], index: 9, kind: output, shape index: {}]  }
   0x1 LB: > { %s2570_s10 = sadd.s32 4294967295, %s3694_s30   ;;  %p2574_p0 = scmp.ge.s32.totalorder %s3694_s30, 1  ;;  %s3694_s30 = sphi %s3749_s30, %s19_s30  }
   0x2   : > { %p287_p1 = scmp.lt.s32.totalorder %s3694_s30, 3 }
   0x4   : > { %p288_p2 = pnand %p2574_p0, %p287_p1 }
   0x5   : > { %v3544_v0 = vld [vmem:[%s4742_s1 + $0x40] sm:$0xff] (!%p288_p2)   ;;  %v3548_v4 = vld [vmem:[%s4742_s1 + $0x48] sm:$0xff] (!%p288_p2)   ;;  %v3552_v8 = vld [vmem:[%s4742_s1 + $0x50] sm:$0xff] (!%p288_p2)   ;;  %p322_p3 = scmp.lt.s32.totalorder (!%p288_p2), %s2570_s10, 1  ;;  %vm3697_vm0 = vmmov (!%p288_p2), 0  }
   0x6   : > { %291 = sbr.rel (%p288_p2) target bundleno = 1250 (0x4e2), region = 56  ;;  %v3545_v1 = vld [vmem:[%s4742_s1 + $0xc0] sm:$0xff] (!%p288_p2)   ;;  %2852 = vmatprep.subr.bf16.mxu0 (!%p288_p2), %v3544_v0  ;;  %v3549_v5 = vld [vmem:[%s4742_s1 + $0xc8] sm:$0xff] (!%p288_p2)   ;;  %v3553_v9 = vld [vmem:[%s4742_s1 + $0xd0] sm:$0xff] (!%p288_p2)  }
   0x7   : > { %v3546_v2 = vld [vmem:[%s4742_s1] sm:$0xff] (!%p288_p2)   ;;  %2874 = vmatprep.subr.bf16.mxu1 (!%p288_p2), %v3545_v1  ;;  %v3550_v6 = vld [vmem:[%s4742_s1 + $0x8] sm:$0xff] (!%p288_p2)   ;;  %v3554_v10 = vld [vmem:[%s4742_s1 + $0x10] sm:$0xff] (!%p288_p2)  }
   0x8   : > { %v3547_v3 = vld [vmem:[%s4742_s1 + $0x80] sm:$0xff] (!%p288_p2)   ;;  %2853 = vmatpush3.bf16.msra.mxu0 (!%p288_p2), %v3546_v2  ;;  %v3551_v7 = vld [vmem:[%s4742_s1 + $0x88] sm:$0xff] (!%p288_p2)   ;;  %v3555_v11 = vld [vmem:[%s4742_s1 + $0x90] sm:$0xff] (!%p288_p2)  }
   0x9   : > { %2875 = vmatpush3.bf16.msra.mxu1 (!%p288_p2), %v3547_v3  ;;  %2854 = vmatprep.subr.bf16.mxu0 (!%p288_p2), %v3548_v4  ;;  %v3556_v12 = vld [vmem:[%s4742_s1 + $0x58] sm:$0xff] (!%p288_p2)   ;;  %v3560_v16 = vld [vmem:[%s4742_s1 + $0x60] sm:$0xff] (!%p288_p2)   ;;  %v3564_v20 = vld [vmem:[%s4742_s1 + $0x68] sm:$0xff] (!%p288_p2)  }
   0xa   : > { %2876 = vmatprep.subr.bf16.mxu1 (!%p288_p2), %v3549_v5  ;;  %v3557_v13 = vld [vmem:[%s4742_s1 + $0xd8] sm:$0xff] (!%p288_p2)   ;;  %v3561_v17 = vld [vmem:[%s4742_s1 + $0xe0] sm:$0xff] (!%p288_p2)   ;;  %v3565_v21 = vld [vmem:[%s4742_s1 + $0xe8] sm:$0xff] (!%p288_p2)  }
   0xb   : > { %v3558_v14 = vld [vmem:[%s4742_s1 + $0x18] sm:$0xff] (!%p288_p2)   ;;  %v3562_v18 = vld [vmem:[%s4742_s1 + $0x20] sm:$0xff] (!%p288_p2)   ;;  %v3566_v22 = vld [vmem:[%s4742_s1 + $0x28] sm:$0xff] (!%p288_p2)  }
   0xc   : > { %2855 = vmatpush3.bf16.msra.mxu0 (!%p288_p2), %v3550_v6  ;;  %v3559_v15 = vld [vmem:[%s4742_s1 + $0x98] sm:$0xff] (!%p288_p2)   ;;  %v3563_v19 = vld [vmem:[%s4742_s1 + $0xa0] sm:$0xff] (!%p288_p2)   ;;  %v3567_v23 = vld [vmem:[%s4742_s1 + $0xa8] sm:$0xff] (!%p288_p2)  }
   0xd   : > { %2877 = vmatpush3.bf16.msra.mxu1 %v3551_v7  ;;  %2856 = vmatprep.subr.bf16.mxu0 %v3552_v8  ;;  %s4756_s10 = smov (!%p322_p3, %s2570_s10), 1  ;;  %v3568_v24 = vld [vmem:[%s4742_s1 + $0x70] sm:$0xff]   ;;  %v3572_v28 = vld [vmem:[%s4742_s1 + $0x78] sm:$0xff]   ;;  %v3580_v38 = vld [vmem:[%s4742_s1 + $0x140] sm:$0xff]  }
   0xe   : > { %2878 = vmatprep.subr.bf16.mxu1 %v3553_v9  ;;  %v3569_v25 = vld [vmem:[%s4742_s1 + $0xf0] sm:$0xff]   ;;  %s2849_s27 = sshll.u32 %s4756_s10, 6  ;;  %v3573_v29 = vld [vmem:[%s4742_s1 + $0xf8] sm:$0xff]   ;;  %v3581_v39 = vld [vmem:[%s4742_s1 + $0x1c0] sm:$0xff]   ;;  %s2577_s13 = sshll.u32 %s4756_s10, 3 }
   0xf   : > { %v3570_v26 = vld [vmem:[%s4742_s1 + $0x30] sm:$0xff]   ;;  %s3857_s17 = scalar_lea.vmem %s4741_s0, %s2849_s27  ;;  %v3574_v30 = vld [vmem:[%s4742_s1 + $0x38] sm:$0xff]   ;;  %v3582_v40 = vld [vmem:[%s4742_s1 + $0x100] sm:$0xff]   ;;  %s330_s19 = scalar_lea.vmem %s4750_s9, %s2577_s13 }
  0x10   : > { %2857 = vmatpush3.bf16.msra.mxu0 %v3554_v10  ;;  %v3571_v27 = vld [vmem:[%s4742_s1 + $0xb0] sm:$0xff]   ;;  %v3575_v31 = vld [vmem:[%s4742_s1 + $0xb8] sm:$0xff]   ;;  %v332_v32 = vld [vmem:[%s3857_s17] sm:$0xff] }
  0x11   : > { %2879 = vmatpush3.bf16.msra.mxu1 %v3555_v11  ;;  %2858 = vmatprep.subr.bf16.mxu0 %v3556_v12  ;;  %v333_v33 = vld [vmem:[%s3857_s17 + $0x8] sm:$0xff]  ;;  %v2579_v34 = vcombine.low %v332_v32, %v332_v32  ;;  %v2580_v35 = vcombine.high %v332_v32, %v332_v32  ;;  %v3583_v41 = vld [vmem:[%s4742_s1 + $0x180] sm:$0xff]   ;;  %v3588_v46 = vld [vmem:[%s4742_s1 + $0x150] sm:$0xff]  }
  0x12   : > { %2880 = vmatprep.subr.bf16.mxu1 %v3557_v13  ;;  %v2581_v36 = vcombine.low %v333_v33, %v333_v33  ;;  %v2582_v37 = vcombine.high %v333_v33, %v333_v33  ;;  %v3584_v42 = vld [vmem:[%s4742_s1 + $0x148] sm:$0xff]   ;;  %v3589_v47 = vld [vmem:[%s4742_s1 + $0x1d0] sm:$0xff]   ;;  %v3592_v50 = vld [vmem:[%s4742_s1 + $0x158] sm:$0xff]  }
  0x13   : > { %1459 = vmatprep.mubr.bf16.mxu0 %v2580_v35  ;;  %v3585_v43 = vld [vmem:[%s4742_s1 + $0x1c8] sm:$0xff]   ;;  %v3590_v48 = vld [vmem:[%s4742_s1 + $0x110] sm:$0xff]   ;;  %v3593_v51 = vld [vmem:[%s4742_s1 + $0x1d8] sm:$0xff]  }
  0x14   : > { %2859 = vmatpush3.bf16.msra.mxu0 %v3558_v14  ;;  %1499 = vmatprep.mubr.bf16.mxu1 %v2582_v37  ;;  %v3586_v44 = vld [vmem:[%s4742_s1 + $0x108] sm:$0xff]   ;;  %v3591_v49 = vld [vmem:[%s4742_s1 + $0x190] sm:$0xff]   ;;  %v3594_v52 = vld [vmem:[%s4742_s1 + $0x118] sm:$0xff]  }
  0x15   : > { %2881 = vmatpush3.bf16.msra.mxu1 %v3559_v15  ;;  %2860 = vmatprep.subr.bf16.mxu0 %v3560_v16  ;;  %v3587_v45 = vld [vmem:[%s4742_s1 + $0x188] sm:$0xff]   ;;  %v3595_v53 = vld [vmem:[%s4742_s1 + $0x198] sm:$0xff]   ;;  %v3596_v54 = vld [vmem:[%s4742_s1 + $0x160] sm:$0xff]  }
  0x16   : > { %2882 = vmatprep.subr.bf16.mxu1 %v3561_v17  ;;  %v3597_v55 = vld [vmem:[%s4742_s1 + $0x1e0] sm:$0xff]   ;;  %v3600_v58 = vld [vmem:[%s4742_s1 + $0x168] sm:$0xff]   ;;  %v3604_v62 = vld [vmem:[%s4742_s1 + $0x170] sm:$0xff]  }
  0x17   : > { %v3598_v56 = vld [vmem:[%s4742_s1 + $0x120] sm:$0xff]   ;;  %v3601_v59 = vld [vmem:[%s4742_s1 + $0x1e8] sm:$0xff]   ;;  %v3605_v63 = vld [vmem:[%s4742_s1 + $0x1f0] sm:$0xff]  }
  0x18   : > { %2861 = vmatpush3.bf16.msra.mxu0 %v3562_v18  ;;  %v3599_v57 = vld [vmem:[%s4742_s1 + $0x1a0] sm:$0xff]   ;;  %v3602_v60 = vld [vmem:[%s4742_s1 + $0x128] sm:$0xff]   ;;  %v3606_v0 = vld [vmem:[%s4742_s1 + $0x130] sm:$0xff]  }
  0x19   : > { %2883 = vmatpush3.bf16.msra.mxu1 %v3563_v19  ;;  %2862 = vmatprep.subr.bf16.mxu0 %v3564_v20  ;;  %v3603_v61 = vld [vmem:[%s4742_s1 + $0x1a8] sm:$0xff]   ;;  %v3607_v1 = vld [vmem:[%s4742_s1 + $0x1b0] sm:$0xff]   ;;  %v3608_v2 = vld [vmem:[%s4742_s1 + $0x178] sm:$0xff]  }
  0x1a   : > { %2884 = vmatprep.subr.bf16.mxu1 %v3565_v21  ;;  %v3609_v3 = vld [vmem:[%s4742_s1 + $0x1f8] sm:$0xff]   ;;  %v334_v6 = vld [vmem:[%s3857_s17 + $0x10] sm:$0xff]  ;;  %v3616_v12 = vld [vmem:[%s4742_s1 + $0x240] sm:$0xff]  }
  0x1b   : > { %v3610_v4 = vld [vmem:[%s4742_s1 + $0x138] sm:$0xff]   ;;  %v2583_v7 = vcombine.low %v334_v6, %v334_v6  ;;  %v2584_v8 = vcombine.high %v334_v6, %v334_v6  ;;  %v3617_v13 = vld [vmem:[%s4742_s1 + $0x2c0] sm:$0xff]   ;;  %v3620_v16 = vld [vmem:[%s4742_s1 + $0x248] sm:$0xff]  }
  0x1c   : > { %2863 = vmatpush3.bf16.msra.mxu0 %v3566_v22  ;;  %v3611_v5 = vld [vmem:[%s4742_s1 + $0x1b8] sm:$0xff]   ;;  %v3618_v14 = vld [vmem:[%s4742_s1 + $0x200] sm:$0xff]   ;;  %v3621_v17 = vld [vmem:[%s4742_s1 + $0x2c8] sm:$0xff]  }
  0x1d   : > { %2885 = vmatpush3.bf16.msra.mxu1 %v3567_v23  ;;  %2864 = vmatprep.subr.bf16.mxu0 %v3568_v24  ;;  %v335_v9 = vld [vmem:[%s3857_s17 + $0x18] sm:$0xff]  ;;  %v3619_v15 = vld [vmem:[%s4742_s1 + $0x280] sm:$0xff]   ;;  %v3622_v18 = vld [vmem:[%s4742_s1 + $0x208] sm:$0xff]  }
  0x1e   : > { %2886 = vmatprep.subr.bf16.mxu1 %v3569_v25  ;;  %v2585_v10 = vcombine.low %v335_v9, %v335_v9  ;;  %v2586_v11 = vcombine.high %v335_v9, %v335_v9  ;;  %v3623_v19 = vld [vmem:[%s4742_s1 + $0x288] sm:$0xff]   ;;  %v3624_v20 = vld [vmem:[%s4742_s1 + $0x250] sm:$0xff]   ;;  %v3628_v24 = vld [vmem:[%s4742_s1 + $0x258] sm:$0xff]  }
  0x1f   : > { %v3625_v21 = vld [vmem:[%s4742_s1 + $0x2d0] sm:$0xff]   ;;  %v3629_v25 = vld [vmem:[%s4742_s1 + $0x2d8] sm:$0xff]   ;;  %v3636_v32 = vld [vmem:[%s4742_s1 + $0x268] sm:$0xff]  }
  0x20   : > { %2865 = vmatpush3.bf16.msra.mxu0 %v3570_v26  ;;  %v3626_v22 = vld [vmem:[%s4742_s1 + $0x210] sm:$0xff]   ;;  %v3630_v26 = vld [vmem:[%s4742_s1 + $0x218] sm:$0xff]   ;;  %v3637_v33 = vld [vmem:[%s4742_s1 + $0x2e8] sm:$0xff]  }
  0x21   : > { %2887 = vmatpush3.bf16.msra.mxu1 %v3571_v27  ;;  %2866 = vmatprep.subr.bf16.mxu0 %v3572_v28  ;;  %v3627_v23 = vld [vmem:[%s4742_s1 + $0x290] sm:$0xff]   ;;  %v3631_v27 = vld [vmem:[%s4742_s1 + $0x298] sm:$0xff]   ;;  %v3632_v28 = vld [vmem:[%s4742_s1 + $0x260] sm:$0xff]  }
  0x22   : > { %2888 = vmatprep.subr.bf16.mxu1 %v3573_v29  ;;  %v3633_v29 = vld [vmem:[%s4742_s1 + $0x2e0] sm:$0xff]   ;;  %v3639_v35 = vld [vmem:[%s4742_s1 + $0x2a8] sm:$0xff]   ;;  %v3641_v37 = vld [vmem:[%s4742_s1 + $0x2f0] sm:$0xff]  }
  0x23   : > { %v3672_v6 = vld [vmem:[%s4742_s1 + $0x368] sm:$0xff]  }
  0x24   : > { %2867 = vmatpush3.bf16.msra.mxu0 %v3574_v30  ;;  %v3634_v30 = vld [vmem:[%s4742_s1 + $0x220] sm:$0xff]   ;;  %v3675_v9 = vld [vmem:[%s4742_s1 + $0x3a8] sm:$0xff]  }
  0x25   : > { %2889 = vmatpush3.bf16.msra.mxu1 %v3575_v31  ;;  %2896 = vmatprep.subr.bf16.mxu0 %v3580_v38  ;;  %v3635_v31 = vld [vmem:[%s4742_s1 + $0x2a0] sm:$0xff]   ;;  %v3642_v38 = vld [vmem:[%s4742_s1 + $0x230] sm:$0xff]  }
  0x26   : > { %2918 = vmatprep.subr.bf16.mxu1 %v3581_v39  ;;  %v3643_v39 = vld [vmem:[%s4742_s1 + $0x2b0] sm:$0xff]  }
  0x27   : > { %1460 = vmatmul.mubr.bf16.vlgmr.msra.gmra.mrb[0].mxu0 %v2579_v34  ;;  %v3638_v34 = vld [vmem:[%s4742_s1 + $0x228] sm:$0xff]  }
  0x28   : > { %1500 = vmatmul.mubr.bf16.vlgmr.msra.gmra.mrb[0].mxu1 %v2581_v36  ;;  %2897 = vmatpush3.bf16.msra.mxu0 %v3582_v40  ;;  %v3640_v36 = vld [vmem:[%s4742_s1 + $0x270] sm:$0xff]   ;;  %v3644_v40 = vld [vmem:[%s4742_s1 + $0x278] sm:$0xff]  }
  0x29   : > { %2919 = vmatpush3.bf16.msra.mxu1 %v3583_v41  ;;  %2898 = vmatprep.subr.bf16.mxu0 %v3584_v42  ;;  %v3645_v41 = vld [vmem:[%s4742_s1 + $0x2f8] sm:$0xff]  }
  0x2a   : > { %2920 = vmatprep.subr.bf16.mxu1 %v3585_v43  ;;  %1539 = vmatprep.mubr.bf16.mxu0 %v2584_v8  ;;  %v3646_v42 = vld [vmem:[%s4742_s1 + $0x238] sm:$0xff]   ;;  %v3674_v8 = vld [vmem:[%s4742_s1 + $0x328] sm:$0xff]  }
  0x2b   : > { %1579 = vmatprep.mubr.bf16.mxu1 %v2586_v11  ;;  %v3647_v43 = vld [vmem:[%s4742_s1 + $0x2b8] sm:$0xff]   ;;  %v3677_v11 = vld [vmem:[%s4742_s1 + $0x3f0] sm:$0xff]  }
  0x2c   : > { %2899 = vmatpush3.bf16.msra.mxu0 %v3586_v44  ;;  %v336_v44 = vld [vmem:[%s3857_s17 + $0x20] sm:$0xff] }
  0x2d   : > { %2921 = vmatpush3.bf16.msra.mxu1 %v3587_v45  ;;  %2900 = vmatprep.subr.bf16.mxu0 %v3588_v46  ;;  %v337_v45 = vld [vmem:[%s3857_s17 + $0x28] sm:$0xff]  ;;  %v2587_v46 = vcombine.low %v336_v44, %v336_v44 }
  0x2e   : > { %2922 = vmatprep.subr.bf16.mxu1 %v3589_v47  ;;  %v2588_v47 = vcombine.high %v336_v44, %v336_v44  ;;  %v1792_v44 = vld [vmem:[%s4744_s3 + $0xa8] sm:$0xff] }
  0x30   : > { %2901 = vmatpush3.bf16.msra.mxu0 %v3590_v48  ;;  %v2589_v48 = vcombine.low %v337_v45, %v337_v45 }
  0x31   : > { %2923 = vmatpush3.bf16.msra.mxu1 %v3591_v49  ;;  %2902 = vmatprep.subr.bf16.mxu0 %v3592_v50  ;;  %v2590_v49 = vcombine.high %v337_v45, %v337_v45  ;;  %v3652_v50 = vld [vmem:[%s4742_s1 + $0x340] sm:$0xff]  }
  0x32   : > { %2924 = vmatprep.subr.bf16.mxu1 %v3593_v51  ;;  %v3653_v51 = vld [vmem:[%s4742_s1 + $0x3c0] sm:$0xff]  }
  0x33   : > { %v1775_v45 = vld [vmem:[%s4744_s3 + $0x20] sm:$0xff] }
  0x34   : > { %2903 = vmatpush3.bf16.msra.mxu0 %v3594_v52  ;;  %v3654_v52 = vld [vmem:[%s4742_s1 + $0x300] sm:$0xff]  }
  0x35   : > { %2925 = vmatpush3.bf16.msra.mxu1 %v3595_v53  ;;  %2904 = vmatprep.subr.bf16.mxu0 %v3596_v54  ;;  %v3655_v53 = vld [vmem:[%s4742_s1 + $0x380] sm:$0xff]   ;;  %v3656_v54 = vld [vmem:[%s4742_s1 + $0x348] sm:$0xff]  }
  0x36   : > { %2926 = vmatprep.subr.bf16.mxu1 %v3597_v55  ;;  %v3657_v55 = vld [vmem:[%s4742_s1 + $0x3c8] sm:$0xff]  }
  0x38   : > { %2905 = vmatpush3.bf16.msra.mxu0 %v3598_v56  ;;  %v3658_v56 = vld [vmem:[%s4742_s1 + $0x308] sm:$0xff]  }
  0x39   : > { %2927 = vmatpush3.bf16.msra.mxu1 %v3599_v57  ;;  %2906 = vmatprep.subr.bf16.mxu0 %v3600_v58  ;;  %v3659_v57 = vld [vmem:[%s4742_s1 + $0x388] sm:$0xff]   ;;  %v3660_v58 = vld [vmem:[%s4742_s1 + $0x350] sm:$0xff]  }
  0x3a   : > { %2928 = vmatprep.subr.bf16.mxu1 %v3601_v59  ;;  %v3661_v59 = vld [vmem:[%s4742_s1 + $0x3d0] sm:$0xff]  }
  0x3c   : > { %2907 = vmatpush3.bf16.msra.mxu0 %v3602_v60  ;;  %v3662_v60 = vld [vmem:[%s4742_s1 + $0x310] sm:$0xff]  }
  0x3d   : > { %2929 = vmatpush3.bf16.msra.mxu1 %v3603_v61  ;;  %2908 = vmatprep.subr.bf16.mxu0 %v3604_v62  ;;  %v3663_v61 = vld [vmem:[%s4742_s1 + $0x390] sm:$0xff]   ;;  %v3664_v62 = vld [vmem:[%s4742_s1 + $0x358] sm:$0xff]  }
  0x3e   : > { %2930 = vmatprep.subr.bf16.mxu1 %v3605_v63  ;;  %v3665_v63 = vld [vmem:[%s4742_s1 + $0x3d8] sm:$0xff]  }
  0x40   : > { %2909 = vmatpush3.bf16.msra.mxu0 %v3606_v0  ;;  %v3666_v0 = vld [vmem:[%s4742_s1 + $0x318] sm:$0xff]  }
  0x41   : > { %2931 = vmatpush3.bf16.msra.mxu1 %v3607_v1  ;;  %2910 = vmatprep.subr.bf16.mxu0 %v3608_v2  ;;  %v3667_v1 = vld [vmem:[%s4742_s1 + $0x398] sm:$0xff]   ;;  %v3668_v2 = vld [vmem:[%s4742_s1 + $0x360] sm:$0xff]  }
  0x42   : > { %2932 = vmatprep.subr.bf16.mxu1 %v3609_v3  ;;  %v3669_v3 = vld [vmem:[%s4742_s1 + $0x3e0] sm:$0xff]  }
  0x44   : > { %2911 = vmatpush3.bf16.msra.mxu0 %v3610_v4  ;;  %v3670_v4 = vld [vmem:[%s4742_s1 + $0x320] sm:$0xff]  }
  0x45   : > { %2933 = vmatpush3.bf16.msra.mxu1 %v3611_v5  ;;  %2940 = vmatprep.subr.bf16.mxu0 %v3616_v12  ;;  %v3671_v5 = vld [vmem:[%s4742_s1 + $0x3a0] sm:$0xff]   ;;  %v3678_v12 = vld [vmem:[%s4742_s1 + $0x330] sm:$0xff]  }
  0x46   : > { %2962 = vmatprep.subr.bf16.mxu1 %v3617_v13  ;;  %v3679_v13 = vld [vmem:[%s4742_s1 + $0x3b0] sm:$0xff]  }
  0x47   : > { %1540 = vmatmul.mubr.bf16.vlgmr.msra.gmra.mrb[4].mxu0 %v2583_v7  ;;  %v3673_v7 = vld [vmem:[%s4742_s1 + $0x3e8] sm:$0xff]  }
  0x48   : > { %1580 = vmatmul.mubr.bf16.vlgmr.msra.gmra.mrb[4].mxu1 %v2585_v10  ;;  %2941 = vmatpush3.bf16.msra.mxu0 %v3618_v14  ;;  %v3676_v10 = vld [vmem:[%s4742_s1 + $0x370] sm:$0xff]   ;;  %v3680_v14 = vld [vmem:[%s4742_s1 + $0x378] sm:$0xff]  }
  0x49   : > { %2963 = vmatpush3.bf16.msra.mxu1 %v3619_v15  ;;  %2942 = vmatprep.subr.bf16.mxu0 %v3620_v16  ;;  %v3681_v15 = vld [vmem:[%s4742_s1 + $0x3f8] sm:$0xff]  }
  0x4a   : > { %2964 = vmatprep.subr.bf16.mxu1 %v3621_v17  ;;  %1619 = vmatprep.mubr.bf16.mxu0 %v2588_v47  ;;  %v3682_v16 = vld [vmem:[%s4742_s1 + $0x338] sm:$0xff]   ;;  %v1776_v47 = vld [vmem:[%s4744_s3 + $0x28] sm:$0xff] }
  0x4b   : > { %1659 = vmatprep.mubr.bf16.mxu1 %v2590_v49  ;;  %v3683_v17 = vld [vmem:[%s4742_s1 + $0x3b8] sm:$0xff]   ;;  %v1808_v49 = vld [vmem:[%s4744_s3 + $0x128] sm:$0xff] }
  0x4c   : > { %2943 = vmatpush3.bf16.msra.mxu0 %v3622_v18  ;;  %v338_v18 = vld [vmem:[%s3857_s17 + $0x30] sm:$0xff] }
  0x4d   : > { %2965 = vmatpush3.bf16.msra.mxu1 %v3623_v19  ;;  %2944 = vmatprep.subr.bf16.mxu0 %v3624_v20  ;;  %v339_v19 = vld [vmem:[%s3857_s17 + $0x38] sm:$0xff]  ;;  %v2591_v20 = vcombine.low %v338_v18, %v338_v18 }
  0x4e   : > { %2966 = vmatprep.subr.bf16.mxu1 %v3625_v21  ;;  %v2592_v21 = vcombine.high %v338_v18, %v338_v18  ;;  %v1783_v18 = vld [vmem:[%s4744_s3 + $0x60] sm:$0xff] }
  0x50   : > { %2945 = vmatpush3.bf16.msra.mxu0 %v3626_v22  ;;  %v2593_v22 = vcombine.low %v339_v19, %v339_v19 }
  0x51   : > { %2967 = vmatpush3.bf16.msra.mxu1 %v3627_v23  ;;  %2946 = vmatprep.subr.bf16.mxu0 %v3628_v24  ;;  %v2594_v23 = vcombine.high %v339_v19, %v339_v19  ;;  %v1787_v24 = vld [vmem:[%s4744_s3 + $0x80] sm:$0xff]  ;;  %v1784_v19 = vld [vmem:[%s4744_s3 + $0x68] sm:$0xff] }
  0x52   : > { %2968 = vmatprep.subr.bf16.mxu1 %v3629_v25  ;;  %v1788_v25 = vld [vmem:[%s4744_s3 + $0x88] sm:$0xff] }
  0x54   : > { %2947 = vmatpush3.bf16.msra.mxu0 %v3630_v26  ;;  %v1771_v26 = vld [vmem:[%s4744_s3] sm:$0xff] }
  0x55   : > { %2969 = vmatpush3.bf16.msra.mxu1 %v3631_v27  ;;  %2948 = vmatprep.subr.bf16.mxu0 %v3632_v28  ;;  %v3341_v27 = vpack.c.bf16 %v1788_v25, %v1787_v24  ;;  %v3696_v28 = vmov 0.0|0.0   ;;  %v1801_v24 = vld [vmem:[%s4744_s3 + $0xf0] sm:$0xff]  ;;  %v1802_v25 = vld [vmem:[%s4744_s3 + $0xf8] sm:$0xff] }
  0x56   : > { %2970 = vmatprep.subr.bf16.mxu1 %v3633_v29  ;;  %v1772_v29 = vld [vmem:[%s4744_s3 + $0x8] sm:$0xff] }
  0x58   : > { %2949 = vmatpush3.bf16.msra.mxu0 %v3634_v30  ;;  %v1803_v30 = vld [vmem:[%s4744_s3 + $0x100] sm:$0xff] }
  0x59   : > { %2971 = vmatpush3.bf16.msra.mxu1 %v3635_v31  ;;  %2950 = vmatprep.subr.bf16.mxu0 %v3636_v32  ;;  %v1804_v31 = vld [vmem:[%s4744_s3 + $0x108] sm:$0xff]  ;;  %v3343_v32 = vpack.c.bf16 %v1772_v29, %v1771_v26  ;;  %v3369_v26 = vpack.c.bf16 %v1802_v25, %v1801_v24  ;;  %v1786_v29 = vld [vmem:[%s4744_s3 + $0x78] sm:$0xff] }
  0x5a   : > { %2972 = vmatprep.subr.bf16.mxu1 %v3637_v33  ;;  %v3374_v33 = vpack.c.bf16 %v1804_v31, %v1803_v30  ;;  %v1817_v30 = vld [vmem:[%s4744_s3 + $0x170] sm:$0xff] }
  0x5c   : > { %2951 = vmatpush3.bf16.msra.mxu0 %v3638_v34  ;;  %v1789_v34 = vld [vmem:[%s4744_s3 + $0x90] sm:$0xff] }
  0x5d   : > { %2973 = vmatpush3.bf16.msra.mxu1 %v3639_v35  ;;  %2952 = vmatprep.subr.bf16.mxu0 %v3640_v36  ;;  %v1790_v35 = vld [vmem:[%s4744_s3 + $0x98] sm:$0xff]  ;;  %v1773_v36 = vld [vmem:[%s4744_s3 + $0x10] sm:$0xff] }
  0x5e   : > { %2974 = vmatprep.subr.bf16.mxu1 %v3641_v37  ;;  %v3345_v37 = vpack.c.bf16 %v1790_v35, %v1789_v34  ;;  %v3698_v34 = vmov 0.0   ;;  %v2746_v35 = vld [vmem:[%s4744_s3 + $0x200] sm:$0xff] }
  0x60   : > { %2953 = vmatpush3.bf16.msra.mxu0 %v3642_v38  ;;  %v1774_v38 = vld [vmem:[%s4744_s3 + $0x18] sm:$0xff] }
  0x61   : > { %2975 = vmatpush3.bf16.msra.mxu1 %v3643_v39  ;;  %2954 = vmatprep.subr.bf16.mxu0 %v3644_v40  ;;  %v1805_v39 = vld [vmem:[%s4744_s3 + $0x110] sm:$0xff]  ;;  %v1806_v40 = vld [vmem:[%s4744_s3 + $0x118] sm:$0xff] }
  0x62   : > { %2976 = vmatprep.subr.bf16.mxu1 %v3645_v41  ;;  %v3347_v41 = vpack.c.bf16 %v1774_v38, %v1773_v36  ;;  %v2747_v36 = vld [vmem:[%s4744_s3 + $0x208] sm:$0xff] }
  0x64   : > { %2955 = vmatpush3.bf16.msra.mxu0 %v3646_v42  ;;  %v3377_v42 = vpack.c.bf16 %v1806_v40, %v1805_v39  ;;  %v2578_v40 = vld [vmem:[%s4743_s2] ss:$0 sm:$0xff] }
  0x65   : > { %2977 = vmatpush3.bf16.msra.mxu1 %v3647_v43  ;;  %2984 = vmatprep.subr.bf16.mxu0 %v3652_v50  ;;  %v1791_v43 = vld [vmem:[%s4744_s3 + $0xa0] sm:$0xff]  ;;  %v1793_v50 = vld [vmem:[%s4744_s3 + $0xb0] sm:$0xff] }
  0x66   : > { %3006 = vmatprep.subr.bf16.mxu1 %v3653_v51  ;;  %v1794_v51 = vld [vmem:[%s4744_s3 + $0xb8] sm:$0xff] }
  0x67   : > { %1620 = vmatmul.mubr.bf16.vlgmr.msra.gmra.mrb[8].mxu0 %v2587_v46  ;;  %v3349_v46 = vpack.c.bf16 %v1792_v44, %v1791_v43 }
  0x68   : > { %1660 = vmatmul.mubr.bf16.vlgmr.msra.gmra.mrb[8].mxu1 %v2589_v48  ;;  %2985 = vmatpush3.bf16.msra.mxu0 %v3654_v52  ;;  %v1807_v48 = vld [vmem:[%s4744_s3 + $0x120] sm:$0xff]  ;;  %v3351_v52 = vpack.c.bf16 %v1776_v47, %v1775_v45 }
  0x69   : > { %3007 = vmatpush3.bf16.msra.mxu1 %v3655_v53  ;;  %2986 = vmatprep.subr.bf16.mxu0 %v3656_v54  ;;  %v3380_v53 = vpack.c.bf16 %v1808_v49, %v1807_v48  ;;  %v1777_v54 = vld [vmem:[%s4744_s3 + $0x30] sm:$0xff] }
  0x6a   : > { %3008 = vmatprep.subr.bf16.mxu1 %v3657_v55  ;;  %1699 = vmatprep.mubr.bf16.mxu0 %v2592_v21  ;;  %v3353_v55 = vpack.c.bf16 %v1794_v51, %v1793_v50  ;;  %v3367_v21 = vpack.c.bf16 %v1784_v19, %v1783_v18 }
  0x6b   : > { %1739 = vmatprep.mubr.bf16.mxu1 %v2594_v23 }
  0x6c   : > { %2987 = vmatpush3.bf16.msra.mxu0 %v3658_v56  ;;  %v1778_v56 = vld [vmem:[%s4744_s3 + $0x38] sm:$0xff] }
  0x6d   : > { %3009 = vmatpush3.bf16.msra.mxu1 %v3659_v57  ;;  %2988 = vmatprep.subr.bf16.mxu0 %v3660_v58  ;;  %v1809_v57 = vld [vmem:[%s4744_s3 + $0x130] sm:$0xff]  ;;  %v1810_v58 = vld [vmem:[%s4744_s3 + $0x138] sm:$0xff] }
  0x6e   : > { %3010 = vmatprep.subr.bf16.mxu1 %v3661_v59  ;;  %v1795_v59 = vld [vmem:[%s4744_s3 + $0xc0] sm:$0xff] }
  0x70   : > { %2989 = vmatpush3.bf16.msra.mxu0 %v3662_v60  ;;  %v1796_v60 = vld [vmem:[%s4744_s3 + $0xc8] sm:$0xff] }
  0x71   : > { %3011 = vmatpush3.bf16.msra.mxu1 %v3663_v61  ;;  %2990 = vmatprep.subr.bf16.mxu0 %v3664_v62  ;;  %v3355_v61 = vpack.c.bf16 %v1778_v56, %v1777_v54  ;;  %v3383_v62 = vpack.c.bf16 %v1810_v58, %v1809_v57 }
  0x72   : > { %3012 = vmatprep.subr.bf16.mxu1 %v3665_v63  ;;  %v1779_v63 = vld [vmem:[%s4744_s3 + $0x40] sm:$0xff] }
  0x74   : > { %2991 = vmatpush3.bf16.msra.mxu0 %v3666_v0  ;;  %v3357_v0 = vpack.c.bf16 %v1796_v60, %v1795_v59 }
  0x75   : > { %3013 = vmatpush3.bf16.msra.mxu1 %v3667_v1  ;;  %2992 = vmatprep.subr.bf16.mxu0 %v3668_v2  ;;  %v1780_v1 = vld [vmem:[%s4744_s3 + $0x48] sm:$0xff]  ;;  %v1811_v2 = vld [vmem:[%s4744_s3 + $0x140] sm:$0xff] }
  0x76   : > { %3014 = vmatprep.subr.bf16.mxu1 %v3669_v3  ;;  %v1812_v3 = vld [vmem:[%s4744_s3 + $0x148] sm:$0xff] }
  0x78   : > { %2993 = vmatpush3.bf16.msra.mxu0 %v3670_v4  ;;  %v1797_v4 = vld [vmem:[%s4744_s3 + $0xd0] sm:$0xff] }
  0x79   : > { %3015 = vmatpush3.bf16.msra.mxu1 %v3671_v5  ;;  %2994 = vmatprep.subr.bf16.mxu0 %v3672_v6  ;;  %v1798_v5 = vld [vmem:[%s4744_s3 + $0xd8] sm:$0xff]  ;;  %v3359_v6 = vpack.c.bf16 %v1780_v1, %v1779_v63 }
  0x7a   : > { %3016 = vmatprep.subr.bf16.mxu1 %v3673_v7  ;;  %v3386_v7 = vpack.c.bf16 %v1812_v3, %v1811_v2 }
  0x7c   : > { %2995 = vmatpush3.bf16.msra.mxu0 %v3674_v8  ;;  %v1781_v8 = vld [vmem:[%s4744_s3 + $0x50] sm:$0xff] }
  0x7d   : > { %3017 = vmatpush3.bf16.msra.mxu1 %v3675_v9  ;;  %2996 = vmatprep.subr.bf16.mxu0 %v3676_v10  ;;  %v3361_v9 = vpack.c.bf16 %v1798_v5, %v1797_v4  ;;  %v1782_v10 = vld [vmem:[%s4744_s3 + $0x58] sm:$0xff] }
  0x7e   : > { %3018 = vmatprep.subr.bf16.mxu1 %v3677_v11  ;;  %v1813_v11 = vld [vmem:[%s4744_s3 + $0x150] sm:$0xff] }
  0x80   : > { %2997 = vmatpush3.bf16.msra.mxu0 %v3678_v12  ;;  %v1814_v12 = vld [vmem:[%s4744_s3 + $0x158] sm:$0xff] }
  0x81   : > { %3019 = vmatpush3.bf16.msra.mxu1 %v3679_v13  ;;  %2998 = vmatprep.subr.bf16.mxu0 %v3680_v14  ;;  %v3363_v13 = vpack.c.bf16 %v1782_v10, %v1781_v8  ;;  %v3389_v14 = vpack.c.bf16 %v1814_v12, %v1813_v11  ;;  %v1747_v11 = vlaneseq }
  0x82   : > { %3020 = vmatprep.subr.bf16.mxu1 %v3681_v15  ;;  %v1799_v15 = vld [vmem:[%s4744_s3 + $0xe0] sm:$0xff] }
  0x83   : > { %v1748_v12 = vshrl.u32 %v1747_v11, 7  ;;  %v2757_v11 = vld [vmem:[%s4744_s3 + $0x258] sm:$0xff] }
  0x84   : > { %2999 = vmatpush3.bf16.msra.mxu0 %v3682_v16  ;;  %v1800_v16 = vld [vmem:[%s4744_s3 + $0xe8] sm:$0xff] }
  0x85   : > { %3021 = vmatpush3.bf16.msra.mxu1 %v3683_v17  ;;  %3342 = vmatprep.subr.bf16.mxu0 %v3341_v27  ;;  %v3365_v17 = vpack.c.bf16 %v1800_v16, %v1799_v15  ;;  %v1785_v27 = vld [vmem:[%s4744_s3 + $0x70] sm:$0xff] }
  0x86   : > { %3373 = vmatprep.subr.bf16.mxu1 %v3696_v28  ;;  %v3371_v31 = vpack.c.bf16 %v1786_v29, %v1785_v27  ;;  %v2762_v27 = vld [vmem:[%s4744_s3 + $0x280] sm:$0xff]  ;;  %v2763_v29 = vld [vmem:[%s4744_s3 + $0x288] sm:$0xff] }
  0x87   : > { %1700 = vmatmul.mubr.bf16.vlgmr.msra.gmra.mrb[12].mxu0 %v2591_v20  ;;  %v1815_v20 = vld [vmem:[%s4744_s3 + $0x160] sm:$0xff] }
  0x88   : > { %1740 = vmatmul.mubr.bf16.vlgmr.msra.gmra.mrb[12].mxu1 %v2593_v22  ;;  %3344 = vmatpush3.bf16.msra.mxu0 %v3343_v32  ;;  %v1816_v22 = vld [vmem:[%s4744_s3 + $0x168] sm:$0xff]  ;;  %v1818_v32 = vld [vmem:[%s4744_s3 + $0x178] sm:$0xff] }
  0x89   : > { %3375 = vmatpush3.bf16.msra.mxu1 %v3374_v33  ;;  %3346 = vmatprep.subr.bf16.mxu0 %v3345_v37  ;;  %v3392_v23 = vpack.c.bf16 %v1816_v22, %v1815_v20  ;;  %v3395_v33 = vpack.c.bf16 %v1818_v32, %v1817_v30  ;;  %v3397_v37 = vpack.c.bf16 %v2747_v36, %v2746_v35  ;;  %v1753_v22 = vand.u32 7, %v1748_v12  ;;  %v2748_v30 = vld [vmem:[%s4744_s3 + $0x210] sm:$0xff] }
  0x8a   : > { %3376 = vmatprep.subr.bf16.mxu1 %v3696_v28  ;;  %3233 = vmatprep.mubr.msk.f32.mxu1 %vm3697_vm0, %v3698_v34  ;;  %v2429_v35 = vld [vmem:[%s4748_s7 + $0x30] sm:$0xff] }
  0x8b   : > { %vm4343_vm1 = vcmp.ne.s32.totalorder %v1753_v22, 0  ;;  %vm4347_vm2 = vcmp.ne.s32.totalorder %v1753_v22, 7 }
  0x8c   : > { %3348 = vmatpush3.bf16.msra.mxu0 %v3347_v41 }
  0x8d   : > { %3378 = vmatpush3.bf16.msra.mxu1 %v3377_v42  ;;  %3350 = vmatprep.subr.bf16.mxu0 %v3349_v46 }
  0x8e   : > { %3379 = vmatprep.subr.bf16.mxu1 %v3696_v28 }
  0x90   : > { %3352 = vmatpush3.bf16.msra.mxu0 %v3351_v52 }
  0x91   : > { %3381 = vmatpush3.bf16.msra.mxu1 %v3380_v53  ;;  %3354 = vmatprep.subr.bf16.mxu0 %v3353_v55 }
  0x92   : > { %3382 = vmatprep.subr.bf16.mxu1 %v3696_v28 }
  0x94   : > { %3356 = vmatpush3.bf16.msra.mxu0 %v3355_v61 }
  0x95   : > { %3384 = vmatpush3.bf16.msra.mxu1 %v3383_v62  ;;  %3358 = vmatprep.subr.bf16.mxu0 %v3357_v0 }
  0x96   : > { %3385 = vmatprep.subr.bf16.mxu1 %v3696_v28 }
  0x98   : > { %3360 = vmatpush3.bf16.msra.mxu0 %v3359_v6 }
  0x99   : > { %3387 = vmatpush3.bf16.msra.mxu1 %v3386_v7  ;;  %3362 = vmatprep.subr.bf16.mxu0 %v3361_v9 }
  0x9a   : > { %3388 = vmatprep.subr.bf16.mxu1 %v3696_v28 }
  0x9c   : > { %3364 = vmatpush3.bf16.msra.mxu0 %v3363_v13 }
  0x9d   : > { %3390 = vmatpush3.bf16.msra.mxu1 %v3389_v14  ;;  %3366 = vmatprep.subr.bf16.mxu0 %v3365_v17 }
  0x9e   : > { %3391 = vmatprep.subr.bf16.mxu1 %v3696_v28 }
  0xa0   : > { %3368 = vmatpush3.bf16.msra.mxu0 %v3367_v21 }
  0xa1   : > { %3393 = vmatpush3.bf16.msra.mxu1 %v3392_v23  ;;  %3370 = vmatprep.subr.bf16.mxu0 %v3369_v26  ;;  %v2730_v23 = vld [vmem:[%s4744_s3 + $0x180] sm:$0xff]  ;;  %v2731_v26 = vld [vmem:[%s4744_s3 + $0x188] sm:$0xff] }
  0xa2   : > { %3394 = vmatprep.subr.bf16.mxu1 %v3696_v28  ;;  %v3399_v36 = vpack.c.bf16 %v2731_v26, %v2730_v23  ;;  %v2743_v23 = vld [vmem:[%s4744_s3 + $0x1e8] sm:$0xff] }
  0xa4   : > { %3372 = vmatpush3.bf16.msra.mxu0 %v3371_v31  ;;  %v2749_v31 = vld [vmem:[%s4744_s3 + $0x218] sm:$0xff] }
  0xa5   : > { %3396 = vmatpush3.bf16.msra.mxu1 %v3395_v33  ;;  %3398 = vmatprep.subr.bf16.mxu0 %v3397_v37  ;;  %v3430_v37 = vpack.c.bf16 %v2763_v29, %v2762_v27  ;;  %v2760_v29 = vld [vmem:[%s4744_s3 + $0x270] sm:$0xff] }
  0xa6   : > { %3429 = vmatprep.subr.bf16.mxu1 %v3696_v28 }
  0xfa   : > { %v2868_v38 = vpop.f32.mrb[0].mxu0 }
  0xfb   : > { %v2890_v39 = vpop.f32.mrb[0].mxu1  ;;  %v2869_v41 = vpop.f32.mrb[1].mxu0 }
  0xfc   : > { %v2891_v42 = vpop.f32.mrb[1].mxu1  ;;  %v2870_v43 = vadd.f32 %v2869_v41, %v2868_v38  ;;  %v2871_v45 = vpop.f32.mrb[2].mxu0  ;;  %v2732_v38 = vld [vmem:[%s4744_s3 + $0x190] sm:$0xff]  ;;  %v3401_v41 = vpack.c.bf16 %v2749_v31, %v2748_v30  ;;  %v2761_v30 = vld [vmem:[%s4744_s3 + $0x278] sm:$0xff] }
  0xfd   : > { %v2892_v44 = vadd.f32 %v2891_v42, %v2890_v39  ;;  %v2893_v46 = vpop.f32.mrb[2].mxu1  ;;  %v2872_v47 = vpop.f32.mrb[3].mxu0  ;;  %v2733_v42 = vld [vmem:[%s4744_s3 + $0x198] sm:$0xff]  ;;  %v2750_v45 = vld [vmem:[%s4744_s3 + $0x220] sm:$0xff]  ;;  %v2744_v31 = vld [vmem:[%s4744_s3 + $0x1f0] sm:$0xff] }
  0xfe   : > { %v2894_v48 = vpop.f32.mrb[3].mxu1  ;;  %v1462_v49 = vadd.f32 %v2870_v43, %v2578_v40  ;;  %v2764_v43 = vld [vmem:[%s4744_s3 + $0x290] sm:$0xff]  ;;  %v2751_v46 = vld [vmem:[%s4744_s3 + $0x228] sm:$0xff]  ;;  %v3403_v47 = vpack.c.bf16 %v2733_v42, %v2732_v38  ;;  %v2777_v38 = vld [vmem:[%s4744_s3 + $0x2f8] sm:$0xff] }
  0xff   : > { %v2805_v42 = vld [vmem:[%s4744_s3 + $0x388] sm:$0xff] }
 0x100   : > { %v1502_v50 = vadd.f32 %v2892_v44, %v1462_v49  ;;  %v2765_v44 = vld [vmem:[%s4744_s3 + $0x298] sm:$0xff]  ;;  %v2734_v49 = vld [vmem:[%s4744_s3 + $0x1a0] sm:$0xff] }
 0x101   : > { %v3433_v48 = vpack.c.bf16 %v2765_v44, %v2764_v43 }
 0x11a   : > { %v2912_v51 = vpop.f32.mrb[4].mxu0 }
 0x11b   : > { %v2934_v52 = vpop.f32.mrb[4].mxu1  ;;  %v2913_v53 = vpop.f32.mrb[5].mxu0 }
 0x11c   : > { %v2935_v54 = vpop.f32.mrb[5].mxu1  ;;  %v2914_v55 = vadd.f32 %v2913_v53, %v2912_v51  ;;  %v2915_v57 = vpop.f32.mrb[6].mxu0  ;;  %v2735_v51 = vld [vmem:[%s4744_s3 + $0x1a8] sm:$0xff] }
 0x11d   : > { %v2936_v56 = vadd.f32 %v2935_v54, %v2934_v52  ;;  %v2937_v58 = vpop.f32.mrb[6].mxu1  ;;  %v2916_v59 = vpop.f32.mrb[7].mxu0  ;;  %v2766_v52 = vld [vmem:[%s4744_s3 + $0x2a0] sm:$0xff]  ;;  %v2767_v53 = vld [vmem:[%s4744_s3 + $0x2a8] sm:$0xff]  ;;  %v2752_v54 = vld [vmem:[%s4744_s3 + $0x230] sm:$0xff] }
 0x11e   : > { %v2938_v60 = vpop.f32.mrb[7].mxu1  ;;  %v1542_v61 = vadd.f32 %v2914_v55, %v1502_v50  ;;  %v3405_v50 = vpack.c.bf16 %v2751_v46, %v2750_v45  ;;  %v2753_v55 = vld [vmem:[%s4744_s3 + $0x238] sm:$0xff]  ;;  %v3436_v57 = vpack.c.bf16 %v2767_v53, %v2766_v52  ;;  %v2736_v58 = vld [vmem:[%s4744_s3 + $0x1b0] sm:$0xff]  ;;  %v2723_v46 = vld [vmem:[%s4745_s4] ss:$0 sm:$0xff] }
 0x11f   : > { %v3409_v59 = vpack.c.bf16 %v2753_v55, %v2752_v54  ;;  %v2737_v60 = vld [vmem:[%s4744_s3 + $0x1b8] sm:$0xff]  ;;  %v2729_v53 = vld [vmem:[%s4747_s6] ss:$0 sm:$0xff] }
 0x120   : > { %v1582_v62 = vadd.f32 %v2936_v56, %v1542_v61  ;;  %v3407_v56 = vpack.c.bf16 %v2735_v51, %v2734_v49  ;;  %v2768_v61 = vld [vmem:[%s4744_s3 + $0x2b0] sm:$0xff]  ;;  %v2728_v51 = vld [vmem:[%s4746_s5] ss:$0 sm:$0xff] }
 0x121   : > { %v2788_v55 = vld [vmem:[%s4744_s3 + $0x300] sm:$0xff] }
 0x13a   : > { %v2956_v63 = vpop.f32.mrb[8].mxu0 }
 0x13b   : > { %v2978_v0 = vpop.f32.mrb[8].mxu1  ;;  %v2957_v1 = vpop.f32.mrb[9].mxu0 }
 0x13c   : > { %v2958_v2 = vadd.f32 %v2957_v1, %v2956_v63  ;;  %v2979_v3 = vpop.f32.mrb[9].mxu1  ;;  %v2959_v4 = vpop.f32.mrb[10].mxu0  ;;  %v3411_v63 = vpack.c.bf16 %v2737_v60, %v2736_v58  ;;  %v2754_v1 = vld [vmem:[%s4744_s3 + $0x240] sm:$0xff]  ;;  %v2806_v60 = vld [vmem:[%s4744_s3 + $0x390] sm:$0xff] }
 0x13d   : > { %v2980_v5 = vadd.f32 %v2979_v3, %v2978_v0  ;;  %v2981_v6 = vpop.f32.mrb[10].mxu1  ;;  %v2960_v7 = vpop.f32.mrb[11].mxu0  ;;  %v2738_v4 = vld [vmem:[%s4744_s3 + $0x1c0] sm:$0xff] }
 0x13e   : > { %v1622_v8 = vadd.f32 %v2958_v2, %v1582_v62  ;;  %v2982_v9 = vpop.f32.mrb[11].mxu1  ;;  %v2769_v62 = vld [vmem:[%s4744_s3 + $0x2b8] sm:$0xff]  ;;  %v2755_v2 = vld [vmem:[%s4744_s3 + $0x248] sm:$0xff]  ;;  %v2770_v6 = vld [vmem:[%s4744_s3 + $0x2c0] sm:$0xff] }
 0x13f   : > { %v3439_v0 = vpack.c.bf16 %v2769_v62, %v2768_v61  ;;  %v3413_v3 = vpack.c.bf16 %v2755_v2, %v2754_v1  ;;  %v2820_v58 = vld [vmem:[%s4744_s3 + $0x400] sm:$0xff]  ;;  %v2807_v61 = vld [vmem:[%s4744_s3 + $0x398] sm:$0xff]  ;;  %v2790_v1 = vld [vmem:[%s4744_s3 + $0x310] sm:$0xff] }
 0x140   : > { %v1662_v10 = vadd.f32 %v2980_v5, %v1622_v8  ;;  %v2739_v5 = vld [vmem:[%s4744_s3 + $0x1c8] sm:$0xff] }
 0x141   : > { %v3415_v7 = vpack.c.bf16 %v2739_v5, %v2738_v4  ;;  %v2771_v8 = vld [vmem:[%s4744_s3 + $0x2c8] sm:$0xff]  ;;  %v3457_v4 = vpack.c.bf16 %v2807_v61, %v2806_v60  ;;  %v2791_v5 = vld [vmem:[%s4744_s3 + $0x318] sm:$0xff]  ;;  %v2802_v61 = vld [vmem:[%s4744_s3 + $0x370] sm:$0xff] }
 0x142   : > { %v3442_v9 = vpack.c.bf16 %v2771_v8, %v2770_v6  ;;  %v2822_v6 = vld [vmem:[%s4744_s3 + $0x410] sm:$0xff]  ;;  %v2808_v8 = vld [vmem:[%s4744_s3 + $0x3a0] sm:$0xff]  ;;  %v2819_v60 = vld [vmem:[%s4744_s3 + $0x3f8] sm:$0xff] }
 0x15a   : > { %v3000_v13 = vpop.f32.mrb[12].mxu0 }
 0x15b   : > { %v3022_v14 = vpop.f32.mrb[12].mxu1  ;;  %v3001_v15 = vpop.f32.mrb[13].mxu0 }
 0x15c   : > { %v3002_v16 = vadd.f32 %v3001_v15, %v3000_v13  ;;  %v3023_v17 = vpop.f32.mrb[13].mxu1  ;;  %v3003_v18 = vpop.f32.mrb[14].mxu0  ;;  %v2740_v13 = vld [vmem:[%s4744_s3 + $0x1d0] sm:$0xff] }
 0x15d   : > { %v3024_v19 = vadd.f32 %v3023_v17, %v3022_v14  ;;  %v3025_v20 = vpop.f32.mrb[14].mxu1  ;;  %v3004_v21 = vpop.f32.mrb[15].mxu0  ;;  %v2741_v14 = vld [vmem:[%s4744_s3 + $0x1d8] sm:$0xff]  ;;  %v2772_v15 = vld [vmem:[%s4744_s3 + $0x2d0] sm:$0xff] }
 0x15e   : > { %v1702_v24 = vadd.f32 %v3002_v16, %v1662_v10  ;;  %v3026_v25 = vpop.f32.mrb[15].mxu1  ;;  %v2756_v10 = vld [vmem:[%s4744_s3 + $0x250] sm:$0xff]  ;;  %v3419_v16 = vpack.c.bf16 %v2741_v14, %v2740_v13  ;;  %v2773_v17 = vld [vmem:[%s4744_s3 + $0x2d8] sm:$0xff]  ;;  %v2759_v20 = vld [vmem:[%s4744_s3 + $0x268] sm:$0xff] }
 0x15f   : > { %v3417_v12 = vpack.c.bf16 %v2757_v11, %v2756_v10  ;;  %v3445_v18 = vpack.c.bf16 %v2773_v17, %v2772_v15  ;;  %v2742_v21 = vld [vmem:[%s4744_s3 + $0x1e0] sm:$0xff]  ;;  %v2775_v25 = vld [vmem:[%s4744_s3 + $0x2e8] sm:$0xff]  ;;  %v3459_v10 = vpack.c.bf16 %v2791_v5, %v2790_v1  ;;  %v2810_v17 = vld [vmem:[%s4744_s3 + $0x3b0] sm:$0xff] }
 0x160   : > { %v1742_v32 = vadd.f32 %v3024_v19, %v1702_v24  ;;  %v2758_v19 = vld [vmem:[%s4744_s3 + $0x260] sm:$0xff]  ;;  %v3423_v26 = vpack.c.bf16 %v2743_v23, %v2742_v21  ;;  %v2793_v14 = vld [vmem:[%s4744_s3 + $0x328] sm:$0xff]  ;;  %v2794_v21 = vld [vmem:[%s4744_s3 + $0x330] sm:$0xff] }
 0x161   : > { %v3421_v22 = vpack.c.bf16 %v2759_v20, %v2758_v19  ;;  %v2774_v24 = vld [vmem:[%s4744_s3 + $0x2e0] sm:$0xff]  ;;  %v2795_v23 = vld [vmem:[%s4744_s3 + $0x338] sm:$0xff] }
 0x162   : > { %v1763_v39 = vrot.slane %v1742_v32, 7  ;;  %v1767_v40 = vrot.slane %v1742_v32, 1  ;;  %1890 = vmatprep.mubr.f32.mxu0 %v1742_v32  ;;  %v3448_v27 = vpack.c.bf16 %v2775_v25, %v2774_v24  ;;  %v3425_v32 = vpack.c.bf16 %v2761_v30, %v2760_v29  ;;  %v2824_v15 = vld [vmem:[%s4744_s3 + $0x420] sm:$0xff]  ;;  %v2826_v24 = vld [vmem:[%s4744_s3 + $0x430] sm:$0xff]  ;;  %v2827_v25 = vld [vmem:[%s4744_s3 + $0x438] sm:$0xff] }
 0x163   : > { %v2812_v29 = vld [vmem:[%s4744_s3 + $0x3c0] sm:$0xff]  ;;  %v2813_v30 = vld [vmem:[%s4744_s3 + $0x3c8] sm:$0xff]  ;;  %v2835_v1 = vld [vmem:[%s4744_s3 + $0x478] sm:$0xff] }
 0x164   : > { %2725 = vmatmul.mubr.msk.f32.vlgmr.msra.gmra.mrb[16].mxu0 %vm4343_vm1, %v1763_v39  ;;  %3234 = vmatmul.mubr.msk.f32.vlgmr.msra.gmra.mrb[16].mxu1 %vm4347_vm2, %v1767_v40 }
 0x165   : > { %3400 = vmatpush3.bf16.msra.mxu0 %v3399_v36  ;;  %3431 = vmatpush3.bf16.msra.mxu1 %v3430_v37  ;;  %v2745_v36 = vld [vmem:[%s4744_s3 + $0x1f8] sm:$0xff]  ;;  %v2776_v37 = vld [vmem:[%s4744_s3 + $0x2f0] sm:$0xff] }
 0x166   : > { %3402 = vmatprep.subr.bf16.mxu0 %v3401_v41  ;;  %3432 = vmatprep.subr.bf16.mxu1 %v3696_v28  ;;  %v3427_v39 = vpack.c.bf16 %v2745_v36, %v2744_v31  ;;  %v3451_v40 = vpack.c.bf16 %v2777_v38, %v2776_v37  ;;  %v2804_v41 = vld [vmem:[%s4744_s3 + $0x380] sm:$0xff]  ;;  %v3469_v31 = vpack.c.bf16 %v2813_v30, %v2812_v29  ;;  %v2797_v36 = vld [vmem:[%s4744_s3 + $0x348] sm:$0xff] }
 0x167   : > { %3268 = vmatprep.mubr.msk.f32.mxu1 %vm3697_vm0, %v3698_v34  ;;  %v3453_v43 = vpack.c.bf16 %v2805_v42, %v2804_v41  ;;  %v2828_v37 = vld [vmem:[%s4744_s3 + $0x440] sm:$0xff]  ;;  %v2814_v41 = vld [vmem:[%s4744_s3 + $0x3d0] sm:$0xff]  ;;  %v2815_v42 = vld [vmem:[%s4744_s3 + $0x3d8] sm:$0xff] }
 0x168   : > { %v2431_v29 = vld [vmem:[%s4748_s7 + $0x40] sm:$0xff]  ;;  %v2432_v30 = vld [vmem:[%s4748_s7 + $0x48] sm:$0xff] }
 0x169   : > { %3404 = vmatpush3.bf16.msra.mxu0 %v3403_v47  ;;  %3434 = vmatpush3.bf16.msra.mxu1 %v3433_v48 }
 0x16a   : > { %3406 = vmatprep.subr.bf16.mxu0 %v3405_v50  ;;  %3435 = vmatprep.subr.bf16.mxu1 %v3696_v28 }
 0x16d   : > { %3408 = vmatpush3.bf16.msra.mxu0 %v3407_v56  ;;  %3437 = vmatpush3.bf16.msra.mxu1 %v3436_v57  ;;  %v2789_v57 = vld [vmem:[%s4744_s3 + $0x308] sm:$0xff] }
 0x16e   : > { %3410 = vmatprep.subr.bf16.mxu0 %v3409_v59  ;;  %3438 = vmatprep.subr.bf16.mxu1 %v3696_v28  ;;  %v2821_v59 = vld [vmem:[%s4744_s3 + $0x408] sm:$0xff] }
 0x171   : > { %3412 = vmatpush3.bf16.msra.mxu0 %v3411_v63  ;;  %3440 = vmatpush3.bf16.msra.mxu1 %v3439_v0  ;;  %v3455_v63 = vpack.c.bf16 %v2789_v57, %v2788_v55  ;;  %v3486_v0 = vpack.c.bf16 %v2821_v59, %v2820_v58  ;;  %v2832_v55 = vld [vmem:[%s4744_s3 + $0x460] sm:$0xff]  ;;  %v2818_v59 = vld [vmem:[%s4744_s3 + $0x3f0] sm:$0xff] }
 0x172   : > { %3441 = vmatprep.subr.bf16.mxu1 %v3696_v28  ;;  %3414 = vmatprep.subr.bf16.mxu0 %v3413_v3 }
 0x175   : > { %3416 = vmatpush3.bf16.msra.mxu0 %v3415_v7  ;;  %3443 = vmatpush3.bf16.msra.mxu1 %v3442_v9  ;;  %v2823_v7 = vld [vmem:[%s4744_s3 + $0x418] sm:$0xff]  ;;  %v2809_v9 = vld [vmem:[%s4744_s3 + $0x3a8] sm:$0xff] }
 0x176   : > { %3444 = vmatprep.subr.bf16.mxu1 %v3696_v28  ;;  %3418 = vmatprep.subr.bf16.mxu0 %v3417_v12  ;;  %v3489_v11 = vpack.c.bf16 %v2823_v7, %v2822_v6  ;;  %v2792_v12 = vld [vmem:[%s4744_s3 + $0x320] sm:$0xff]  ;;  %v3461_v13 = vpack.c.bf16 %v2809_v9, %v2808_v8 }
 0x177   : > { %v3463_v19 = vpack.c.bf16 %v2793_v14, %v2792_v12  ;;  %v2779_v6 = vld [vmem:[%s4745_s4 + $0x1] ss:$0 sm:$0xff] }
 0x179   : > { %3420 = vmatpush3.bf16.msra.mxu0 %v3419_v16  ;;  %3446 = vmatpush3.bf16.msra.mxu1 %v3445_v18  ;;  %v2825_v16 = vld [vmem:[%s4744_s3 + $0x428] sm:$0xff]  ;;  %v2811_v18 = vld [vmem:[%s4744_s3 + $0x3b8] sm:$0xff] }
 0x17a   : > { %3447 = vmatprep.subr.bf16.mxu1 %v3696_v28  ;;  %3422 = vmatprep.subr.bf16.mxu0 %v3421_v22  ;;  %v3492_v20 = vpack.c.bf16 %v2825_v16, %v2824_v15  ;;  %v3465_v22 = vpack.c.bf16 %v2811_v18, %v2810_v17  ;;  %v2423_v16 = vld [vmem:[%s4748_s7] sm:$0xff]  ;;  %v2424_v17 = vld [vmem:[%s4748_s7 + $0x8] sm:$0xff] }
 0x17d   : > { %3424 = vmatpush3.bf16.msra.mxu0 %v3423_v26  ;;  %3449 = vmatpush3.bf16.msra.mxu1 %v3448_v27  ;;  %v3467_v26 = vpack.c.bf16 %v2795_v23, %v2794_v21  ;;  %v3495_v27 = vpack.c.bf16 %v2827_v25, %v2826_v24  ;;  %v2426_v23 = vld [vmem:[%s4748_s7 + $0x18] sm:$0xff]  ;;  %v2427_v25 = vld [vmem:[%s4748_s7 + $0x20] sm:$0xff] }
 0x17e   : > { %3426 = vmatprep.subr.bf16.mxu0 %v3425_v32  ;;  %3450 = vmatprep.subr.bf16.mxu1 %v3696_v28  ;;  %v2796_v32 = vld [vmem:[%s4744_s3 + $0x340] sm:$0xff] }
 0x17f   : > { %v3471_v38 = vpack.c.bf16 %v2797_v36, %v2796_v32  ;;  %v2433_v32 = vld [vmem:[%s4748_s7 + $0x50] sm:$0xff]  ;;  %v2434_v36 = vld [vmem:[%s4748_s7 + $0x58] sm:$0xff] }
 0x181   : > { %3428 = vmatpush3.bf16.msra.mxu0 %v3427_v39  ;;  %3452 = vmatpush3.bf16.msra.mxu1 %v3451_v40  ;;  %v2829_v39 = vld [vmem:[%s4744_s3 + $0x448] sm:$0xff] }
 0x182   : > { %3485 = vmatprep.subr.bf16.mxu1 %v3696_v28  ;;  %3454 = vmatprep.subr.bf16.mxu0 %v3453_v43  ;;  %v3498_v40 = vpack.c.bf16 %v2829_v39, %v2828_v37  ;;  %v3473_v43 = vpack.c.bf16 %v2815_v42, %v2814_v41  ;;  %v3525_v37 = vpack.c.bf16 %v2434_v36, %v2433_v32  ;;  %v2436_v39 = vld [vmem:[%s4748_s7 + $0x68] sm:$0xff]  ;;  %v2437_v41 = vld [vmem:[%s4748_s7 + $0x70] sm:$0xff]  ;;  %v2438_v42 = vld [vmem:[%s4748_s7 + $0x78] sm:$0xff] }
 0x237   : > { %v3060_v44 = vpop.f32.mrb[16].mxu0  ;;  %v1962_v45 = vpop.f32.mrb[16].mxu1 }
 0x238   : > { %v3061_v47 = vpop.f32.mrb[17].mxu0  ;;  %v3235_v48 = vpop.f32.mrb[17].mxu1 }
 0x239   : > { %v3062_v49 = vadd.f32 %v3061_v47, %v3060_v44  ;;  %v2798_v44 = vld [vmem:[%s4744_s3 + $0x350] sm:$0xff]  ;;  %v2831_v48 = vld [vmem:[%s4744_s3 + $0x458] sm:$0xff] }
 0x23b   : > { %v1893_v50 = vadd.f32 %v3062_v49, %v2723_v46  ;;  %v2830_v46 = vld [vmem:[%s4744_s3 + $0x450] sm:$0xff] }
 0x23c   : > { %v3501_v49 = vpack.c.bf16 %v2831_v48, %v2830_v46  ;;  %v2837_v46 = vld [vmem:[%s4745_s4 + $0x2] ss:$0 sm:$0xff] }
 0x23d   : > { %v1963_v52 = vadd.f32 %v1962_v45, %v1893_v50  ;;  %v2799_v45 = vld [vmem:[%s4744_s3 + $0x358] sm:$0xff]  ;;  %v2816_v50 = vld [vmem:[%s4744_s3 + $0x3e0] sm:$0xff] }
 0x23e   : > { %v3475_v47 = vpack.c.bf16 %v2799_v45, %v2798_v44 }
 0x23f   : > { %v1973_v54 = vmul.f32 %v2728_v51, %v1963_v52  ;;  %v2817_v51 = vld [vmem:[%s4744_s3 + $0x3e8] sm:$0xff]  ;;  %v2800_v52 = vld [vmem:[%s4744_s3 + $0x360] sm:$0xff] }
 0x241   : > { %v1981_v56 = vadd.f32 %v2729_v53, %v1973_v54  ;;  %v3477_v53 = vpack.c.bf16 %v2817_v51, %v2816_v50  ;;  %v2801_v54 = vld [vmem:[%s4744_s3 + $0x368] sm:$0xff]  ;;  %v2843_v51 = vld [vmem:[%s4746_s5 + $0x2] ss:$0 sm:$0xff] }
 0x242   : > { %v3479_v57 = vpack.c.bf16 %v2801_v54, %v2800_v52 }
 0x243   : > { %v1982_v62 = vmax.f32 %v1981_v56, 0.0  ;;  %v2833_v56 = vld [vmem:[%s4744_s3 + $0x468] sm:$0xff] }
 0x244   : > { %v3504_v58 = vpack.c.bf16 %v2833_v56, %v2832_v55  ;;  %v2846_v56 = vld [vmem:[%s4749_s8] ss:$0 sm:$0xff] }
 0x245   : > { %v1983_v2 = vrot.slane %v1982_v62, 7  ;;  %v1985_v3 = vrot.slane %v1982_v62, 1  ;;  %2108 = vmatprep.mubr.f32.mxu0 %v1982_v62  ;;  %v3481_v62 = vpack.c.bf16 %v2819_v60, %v2818_v59 }
 0x247   : > { %2781 = vmatmul.mubr.msk.f32.vlgmr.msra.gmra.mrb[18].mxu0 %vm4343_vm1, %v1983_v2  ;;  %3269 = vmatmul.mubr.msk.f32.vlgmr.msra.gmra.mrb[18].mxu1 %vm4347_vm2, %v1985_v3 }
 0x248   : > { %3456 = vmatpush3.bf16.msra.mxu0 %v3455_v63  ;;  %3487 = vmatpush3.bf16.msra.mxu1 %v3486_v0  ;;  %v2803_v63 = vld [vmem:[%s4744_s3 + $0x378] sm:$0xff]  ;;  %v2834_v0 = vld [vmem:[%s4744_s3 + $0x470] sm:$0xff] }
 0x249   : > { %3458 = vmatprep.subr.bf16.mxu0 %v3457_v4  ;;  %3488 = vmatprep.subr.bf16.mxu1 %v3696_v28  ;;  %v3483_v2 = vpack.c.bf16 %v2803_v63, %v2802_v61  ;;  %v3507_v3 = vpack.c.bf16 %v2835_v1, %v2834_v0 }
 0x24a   : > { %3303 = vmatprep.mubr.msk.f32.mxu1 %vm3697_vm0, %v3698_v34 }
 0x24c   : > { %3460 = vmatpush3.bf16.msra.mxu0 %v3459_v10  ;;  %3490 = vmatpush3.bf16.msra.mxu1 %v3489_v11  ;;  %v2785_v11 = vld [vmem:[%s4746_s5 + $0x1] ss:$0 sm:$0xff] }
 0x24d   : > { %3462 = vmatprep.subr.bf16.mxu0 %v3461_v13  ;;  %3491 = vmatprep.subr.bf16.mxu1 %v3696_v28  ;;  %v2787_v13 = vld [vmem:[%s4747_s6 + $0x1] ss:$0 sm:$0xff] }
 0x250   : > { %3464 = vmatpush3.bf16.msra.mxu0 %v3463_v19  ;;  %3493 = vmatpush3.bf16.msra.mxu1 %v3492_v20  ;;  %v3510_v19 = vpack.c.bf16 %v2424_v17, %v2423_v16 }
 0x251   : > { %3466 = vmatprep.subr.bf16.mxu0 %v3465_v22  ;;  %3494 = vmatprep.subr.bf16.mxu1 %v3696_v28  ;;  %v2425_v22 = vld [vmem:[%s4748_s7 + $0x10] sm:$0xff] }
 0x252   : > { %v3513_v24 = vpack.c.bf16 %v2426_v23, %v2425_v22 }
 0x254   : > { %3468 = vmatpush3.bf16.msra.mxu0 %v3467_v26  ;;  %3496 = vmatpush3.bf16.msra.mxu1 %v3495_v27  ;;  %v2428_v26 = vld [vmem:[%s4748_s7 + $0x28] sm:$0xff] }
 0x255   : > { %3497 = vmatprep.subr.bf16.mxu1 %v3696_v28  ;;  %3470 = vmatprep.subr.bf16.mxu0 %v3469_v31  ;;  %v3516_v33 = vpack.c.bf16 %v2428_v26, %v2427_v25  ;;  %v3522_v31 = vpack.c.bf16 %v2432_v30, %v2431_v29 }
 0x258   : > { %3472 = vmatpush3.bf16.msra.mxu0 %v3471_v38  ;;  %3499 = vmatpush3.bf16.msra.mxu1 %v3498_v40  ;;  %v2435_v38 = vld [vmem:[%s4748_s7 + $0x60] sm:$0xff] }
 0x259   : > { %3500 = vmatprep.subr.bf16.mxu1 %v3696_v28  ;;  %3474 = vmatprep.subr.bf16.mxu0 %v3473_v43  ;;  %v3528_v40 = vpack.c.bf16 %v2436_v39, %v2435_v38  ;;  %v3531_v43 = vpack.c.bf16 %v2438_v42, %v2437_v41 }
 0x25c   : > { %3476 = vmatpush3.bf16.msra.mxu0 %v3475_v47  ;;  %3502 = vmatpush3.bf16.msra.mxu1 %v3501_v49 }
 0x25d   : > { %3503 = vmatprep.subr.bf16.mxu1 %v3696_v28  ;;  %3478 = vmatprep.subr.bf16.mxu0 %v3477_v53 }
 0x260   : > { %3480 = vmatpush3.bf16.msra.mxu0 %v3479_v57  ;;  %3505 = vmatpush3.bf16.msra.mxu1 %v3504_v58 }
 0x261   : > { %3482 = vmatprep.subr.bf16.mxu0 %v3481_v62  ;;  %3506 = vmatprep.subr.bf16.mxu1 %v3696_v28 }
 0x264   : > { %3484 = vmatpush3.bf16.msra.mxu0 %v3483_v2  ;;  %3508 = vmatpush3.bf16.msra.mxu1 %v3507_v3 }
 0x265   : > { %3509 = vmatprep.subr.bf16.mxu0 %v3696_v28 }
 0x31a   : > { %v3112_v4 = vpop.f32.mrb[18].mxu0  ;;  %v2180_v5 = vpop.f32.mrb[18].mxu1 }
 0x31b   : > { %v3113_v7 = vpop.f32.mrb[19].mxu0  ;;  %v3270_v8 = vpop.f32.mrb[19].mxu1 }
 0x31c   : > { %v3114_v9 = vadd.f32 %v3113_v7, %v3112_v4 }
 0x31e   : > { %v2111_v10 = vadd.f32 %v3114_v9, %v2779_v6 }
 0x320   : > { %v2181_v12 = vadd.f32 %v2180_v5, %v2111_v10 }
 0x322   : > { %v2192_v14 = vmul.f32 %v2785_v11, %v2181_v12 }
 0x324   : > { %v2201_v15 = vadd.f32 %v2787_v13, %v2192_v14 }
 0x326   : > { %v2202_v18 = vmax.f32 %v2201_v15, 0.0 }
 0x328   : > { %v2203_v20 = vrot.slane %v2202_v18, 7  ;;  %v2205_v21 = vrot.slane %v2202_v18, 1  ;;  %2328 = vmatprep.mubr.f32.mxu0 %v2202_v18 }
 0x32a   : > { %2839 = vmatmul.mubr.msk.f32.vlgmr.msra.gmra.mrb[20].mxu0 %vm4343_vm1, %v2203_v20  ;;  %3304 = vmatmul.mubr.msk.f32.vlgmr.msra.gmra.mrb[20].mxu1 %vm4347_vm2, %v2205_v21 }
 0x32b   : > { %3511 = vmatpush3.bf16.msra.mxu0 %v3510_v19  ;;  %3338 = vmatprep.mubr.msk.f32.mxu0 %vm3697_vm0, %v3698_v34  ;;  %v2430_v34 = vld [vmem:[%s4748_s7 + $0x38] sm:$0xff] }
 0x32c   : > { %3512 = vmatprep.subr.bf16.mxu0 %v3696_v28  ;;  %v3519_v27 = vpack.c.bf16 %v2430_v34, %v2429_v35 }
 0x32f   : > { %3514 = vmatpush3.bf16.msra.mxu0 %v3513_v24 }
 0x330   : > { %3515 = vmatprep.subr.bf16.mxu0 %v3696_v28 }
 0x333   : > { %3517 = vmatpush3.bf16.msra.mxu0 %v3516_v33 }
 0x334   : > { %3518 = vmatprep.subr.bf16.mxu0 %v3696_v28 }
 0x337   : > { %3520 = vmatpush3.bf16.msra.mxu0 %v3519_v27 }
 0x338   : > { %3521 = vmatprep.subr.bf16.mxu0 %v3696_v28 }
 0x33b   : > { %3523 = vmatpush3.bf16.msra.mxu0 %v3522_v31 }
 0x33c   : > { %3524 = vmatprep.subr.bf16.mxu0 %v3696_v28 }
 0x33f   : > { %3526 = vmatpush3.bf16.msra.mxu0 %v3525_v37 }
 0x340   : > { %3527 = vmatprep.subr.bf16.mxu0 %v3696_v28 }
 0x343   : > { %3529 = vmatpush3.bf16.msra.mxu0 %v3528_v40 }
 0x344   : > { %3530 = vmatprep.subr.bf16.mxu0 %v3696_v28  ;;  %v2845_v28 = vld [vmem:[%s4747_s6 + $0x2] ss:$0 sm:$0xff] }
 0x347   : > { %3532 = vmatpush3.bf16.msra.mxu0 %v3531_v43 }
 0x3fd   : > { %v3164_v44 = vpop.f32.mrb[20].mxu0  ;;  %v2400_v45 = vpop.f32.mrb[20].mxu1 }
 0x3fe   : > { %v3165_v47 = vpop.f32.mrb[21].mxu0  ;;  %v3305_v48 = vpop.f32.mrb[21].mxu1 }
 0x3ff   : > { %v3166_v49 = vadd.f32 %v3165_v47, %v3164_v44 }
 0x401   : > { %v2331_v50 = vadd.f32 %v3166_v49, %v2837_v46 }
 0x403   : > { %v2401_v52 = vadd.f32 %v2400_v45, %v2331_v50 }
 0x405   : > { %v2412_v53 = vmul.f32 %v2843_v51, %v2401_v52 }
 0x407   : > { %v2421_v54 = vadd.f32 %v2845_v28, %v2412_v53 }
 0x409   : > { %v2422_v55 = vmax.f32 %v2421_v54, 0.0 }
 0x40b   : > { %3339 = vmatmul.mubr.f32.vlgmr.msra.gmra.mrb[22].mxu0 %v2422_v55 }
 0x4de   : > { %v2512_v57 = vpop.f32.mrb[22].mxu0 }
 0x4df   : > { %v2513_v58 = vadd.f32 %v2846_v56, %v2512_v57  ;;  %v3340_v59 = vpop.f32.mrb[23].mxu0 }
 0x4e1   : > { %2516 = vst [vmem:[%s330_s19] sm:$0xff] %v2513_v58 }
 0x4e2 PF: > { %s19_s30 = sadd.s32 1, %s3694_s30  }
 0x4e3   : > { %p16_p4 = scmp.ge.s32.totalorder %s19_s30, 4  }
 0x4e5   :  { %18 = sbr.rel (!%p16_p4) target bundleno = 1 (0x1), region = 94 }

</bundles_post_ra>
